<compile_context>
chip_gen: v5e
topology: v5e:2x2
jax: 0.10.0
libtpu: 0.0.40
codegen_flags: <defaults>
</compile_context>

<pallas_src>
import math
from functools import partial

import jax
import jax.numpy as jnp
from jax.experimental import pallas as pl
from jax.experimental.pallas import tpu as pltpu


# ----------------------------- Pallas kernel ------------------------------ #
def _mha_kernel(q_ref, k_ref, v_ref,
                wqkv_ref, bqkv_ref, wo_ref, bo_ref,
                o_ref,
                *, n_heads: int, kq_dim: int, v_dim: int):
    Bblk, S, Dm = q_ref.shape
    M = Bblk * S
    hd = kq_dim // n_heads      # per-head query/key dim
    hv = v_dim // n_heads       # per-head value dim

    # ---- fused Q|K|V projection: one lane-dense GEMM, bf16 operands ----
    x_cat = jnp.concatenate([q_ref[...], k_ref[...], v_ref[...]], axis=-1)
    x_cat = x_cat.reshape(M, 3 * Dm).astype(jnp.bfloat16)
    qkv = jnp.dot(x_cat, wqkv_ref[...],
                  preferred_element_type=jnp.float32) + bqkv_ref[...]
    qkv = qkv.reshape(Bblk, S, 2 * kq_dim + v_dim)      # leading-dim split, free

    # ---- per-head attention, head-merge fused into the output projection ----
    # out = concat_h(ctx_h) @ Wo  ==  sum_h ctx_h @ Wo[h]   (no lane concat)
    out_acc = jnp.zeros((M, Dm), jnp.float32)
    for h in range(n_heads):            # static unroll; one head live at a time
        qh = qkv[:, :, h * hd:(h + 1) * hd].astype(jnp.bfloat16)   # pre-scaled
        kh = qkv[:, :, kq_dim + h * hd:
                       kq_dim + (h + 1) * hd].astype(jnp.bfloat16)
        vh = qkv[:, :, 2 * kq_dim + h * hv:
                       2 * kq_dim + (h + 1) * hv].astype(jnp.bfloat16)

        # scores: (Bblk, S, S), f32 accumulation
        s = jnp.einsum('bqd,bkd->bqk', qh, kh,
                       preferred_element_type=jnp.float32)
        s = s - jnp.max(s, axis=-1, keepdims=True)
        p = jnp.exp(s)                                              # f32 exp
        p = p * pl.reciprocal(jnp.sum(p, axis=-1, keepdims=True), approx=True)

        ctx = jnp.einsum('bqk,bkd->bqd', p.astype(jnp.bfloat16), vh,
                         preferred_element_type=jnp.float32)        # (Bblk,S,hv)
        out_acc = out_acc + jnp.dot(ctx.reshape(M, hv), wo_ref[h],
                                    preferred_element_type=jnp.float32)

    out = out_acc + bo_ref[...]
    o_ref[...] = out.reshape(Bblk, S, Dm).astype(o_ref.dtype)

    # TODO(synk): optional attention `mask` (default None in the PyTorch
    # forward) is not wired through; only the mask=None path is kernelized.
    # TODO(synk): for non-toy S, switch to flash-style tiling (parallel q-tile
    # axis + arbitrary kv-tile axis with online-softmax m/l/acc scratch) so the
    # full (S, S) score tensor is never materialized and VMEM stays bounded
    # (budget against 64 MiB on v7x).


# ------------------------------ Python wrapper ----------------------------- #
def multi_head_attention(queries, keys, values, params, *, n_heads,
                         batch_block=8):
    """queries/keys/values: (B, S, Dm) float32. Returns (B, S, Dm)."""
    B, S, Dm = queries.shape
    wq, bq, wk, bk, wv, bv, wo, bo = params
    kq_dim = wq.shape[1]
    v_dim = wv.shape[1]

    assert Dm % n_heads == 0, "model dim must be divisible by n_heads"
    assert kq_dim % n_heads == 0 and v_dim % n_heads == 0
    hv = v_dim // n_heads

    block_b = min(batch_block, B)
    assert B % block_b == 0, "batch must be divisible by the batch block"

    inv_scale = 1.0 / math.sqrt(kq_dim // n_heads)

    # Block-diagonal fused QKV weight (bf16) with 1/scale folded into Wq / bq.
    n_qkv = 2 * kq_dim + v_dim
    w_qkv = jnp.zeros((3 * Dm, n_qkv), jnp.float32)
    w_qkv = w_qkv.at[:Dm, :kq_dim].set(wq * inv_scale)
    w_qkv = w_qkv.at[Dm:2 * Dm, kq_dim:2 * kq_dim].set(wk)
    w_qkv = w_qkv.at[2 * Dm:, 2 * kq_dim:].set(wv)
    w_qkv = w_qkv.astype(jnp.bfloat16)
    b_qkv = jnp.concatenate([bq * inv_scale, bk, bv]).reshape(1, n_qkv)

    wo_heads = wo.reshape(n_heads, hv, Dm)     # head-major split of Wo
    bo2 = bo.reshape(1, Dm)

    kernel = partial(_mha_kernel, n_heads=n_heads, kq_dim=kq_dim, v_dim=v_dim)

    return pl.pallas_call(
        kernel,
        out_shape=jax.ShapeDtypeStruct((B, S, Dm), queries.dtype),
        grid_spec=pltpu.PrefetchScalarGridSpec(
            num_scalar_prefetch=0,
            grid=(B // block_b,),
            in_specs=[
                pl.BlockSpec((block_b, S, Dm), lambda b: (b, 0, 0)),  # queries
                pl.BlockSpec((block_b, S, Dm), lambda b: (b, 0, 0)),  # keys
                pl.BlockSpec((block_b, S, Dm), lambda b: (b, 0, 0)),  # values
                pl.BlockSpec(w_qkv.shape, lambda b: (0, 0)),          # fused W
                pl.BlockSpec(b_qkv.shape, lambda b: (0, 0)),          # fused b
                pl.BlockSpec(wo_heads.shape, lambda b: (0, 0, 0)),    # Wo[h]
                pl.BlockSpec(bo2.shape, lambda b: (0, 0)),            # bo
            ],
            out_specs=pl.BlockSpec((block_b, S, Dm), lambda b: (b, 0, 0)),
        ),
        compiler_params=pltpu.CompilerParams(
            dimension_semantics=("parallel",)),
    )(queries, keys, values, w_qkv, b_qkv, wo_heads, bo2)


# --------------------------- reference (pure JAX) --------------------------- #
def mha_reference(queries, keys, values, params, *, n_heads):
    wq, bq, wk, bk, wv, bv, wo, bo = params
    B, S, Dm = queries.shape
    kq_dim = wq.shape[1]
    v_dim = wv.shape[1]
    scale = math.sqrt(kq_dim // n_heads)

    def to_heads(x, d):
        return x.reshape(B, S, n_heads, d // n_heads).transpose(0, 2, 1, 3)

    Q = to_heads(queries @ wq + bq, kq_dim)      # (B, H, S, hd)
    K = to_heads(keys @ wk + bk, kq_dim)
    V = to_heads(values @ wv + bv, v_dim)

    scores = jnp.einsum("bhqd,bhkd->bhqk", Q, K) / scale
    p = jax.nn.softmax(scores, axis=-1)
    ctx = jnp.einsum("bhqk,bhkd->bhqd", p, V)    # (B, H, S, vh)
    ctx = ctx.transpose(0, 2, 1, 3).reshape(B, S, v_dim)
    return ctx @ wo + bo


# ---------------------------------- main ----------------------------------- #
if __name__ == "__main__":
    B, S = 2, 16
    model_dim, kq_dim, v_dim, n_heads = 128, 64, 64, 8

    key = jax.random.PRNGKey(0)
    ks = jax.random.split(key, 12)

    def linear_init(kw, kb, fan_in, fan_out):
        bound = 1.0 / math.sqrt(fan_in)
        w = jax.random.uniform(kw, (fan_in, fan_out), jnp.float32, -bound, bound)
        b = jax.random.uniform(kb, (fan_out,), jnp.float32, -bound, bound)
        return w, b

    wq, bq = linear_init(ks[0], ks[1], model_dim, kq_dim)
    wk, bk = linear_init(ks[2], ks[3], model_dim, kq_dim)
    wv, bv = linear_init(ks[4], ks[5], model_dim, v_dim)
    wo, bo = linear_init(ks[6], ks[7], v_dim, model_dim)
    params = (wq, bq, wk, bk, wv, bv, wo, bo)

    queries = jax.random.normal(ks[8], (B, S, model_dim), jnp.float32)
    keys = jax.random.normal(ks[9], (B, S, model_dim), jnp.float32)
    values = jax.random.normal(ks[10], (B, S, model_dim), jnp.float32)

    out = multi_head_attention(queries, keys, values, params, n_heads=n_heads)
    out = jax.block_until_ready(out)

    ref = mha_reference(queries, keys, values, params, n_heads=n_heads)
    assert out.shape == (B, S, model_dim)
    # bf16 matmul operands + approx reciprocal -> loosened tolerance vs f32 ref.
    assert jnp.allclose(out, ref, atol=2e-2, rtol=2e-2), \
        "mismatch vs pure-JAX reference"

    print("KERNEL_OK")
</pallas_src>

<mosaic_0001>
module attributes {stable_mosaic.version = 11 : i64} {
  func.func @_mha_kernel(%arg0: i32, %arg1: memref<2x16x128xf32, #tpu.memory_space<vmem>>, %arg2: memref<2x16x128xf32, #tpu.memory_space<vmem>>, %arg3: memref<2x16x128xf32, #tpu.memory_space<vmem>>, %arg4: memref<384x192xbf16, #tpu.memory_space<vmem>>, %arg5: memref<1x192xf32, #tpu.memory_space<vmem>>, %arg6: memref<8x8x128xf32, #tpu.memory_space<vmem>>, %arg7: memref<1x128xf32, #tpu.memory_space<vmem>>, %arg8: memref<2x16x128xf32, #tpu.memory_space<vmem>>) attributes {dimension_semantics = [#tpu.dimension_semantics<parallel>], iteration_bounds = array<i64: 1>, scalar_prefetch = 0 : i64, scratch_operands = 0 : i64, tpu.core_type = #tpu.core_type<tc>, window_params = [{transform_indices = @transform_0, window_bounds = array<i64: 2, 16, 128>}, {transform_indices = @transform_1, window_bounds = array<i64: 2, 16, 128>}, {transform_indices = @transform_2, window_bounds = array<i64: 2, 16, 128>}, {pipeline_mode = #tpu.pipeline_mode<synchronous>, transform_indices = @transform_3, window_bounds = array<i64: 384, 192>}, {pipeline_mode = #tpu.pipeline_mode<synchronous>, transform_indices = @transform_4, window_bounds = array<i64: 1, 192>}, {pipeline_mode = #tpu.pipeline_mode<synchronous>, transform_indices = @transform_5, window_bounds = array<i64: 8, 8, 128>}, {pipeline_mode = #tpu.pipeline_mode<synchronous>, transform_indices = @transform_6, window_bounds = array<i64: 1, 128>}, {transform_indices = @transform_7, window_bounds = array<i64: 2, 16, 128>}]} {
    %c0 = arith.constant 0 : index
    %c0_0 = arith.constant 0 : index
    %c0_1 = arith.constant 0 : index
    %0 = vector.load %arg1[%c0, %c0_0, %c0_1] : memref<2x16x128xf32, #tpu.memory_space<vmem>>, vector<2x16x128xf32>
    %c0_2 = arith.constant 0 : index
    %c0_3 = arith.constant 0 : index
    %c0_4 = arith.constant 0 : index
    %1 = vector.load %arg2[%c0_2, %c0_3, %c0_4] : memref<2x16x128xf32, #tpu.memory_space<vmem>>, vector<2x16x128xf32>
    %c0_5 = arith.constant 0 : index
    %c0_6 = arith.constant 0 : index
    %c0_7 = arith.constant 0 : index
    %2 = vector.load %arg3[%c0_5, %c0_6, %c0_7] : memref<2x16x128xf32, #tpu.memory_space<vmem>>, vector<2x16x128xf32>
    %3 = tpu.concatenate %0, %1, %2 in 2 : vector<2x16x128xf32>, vector<2x16x128xf32>, vector<2x16x128xf32> -> vector<2x16x384xf32>
    %4 = vector.shape_cast %3 : vector<2x16x384xf32> to vector<32x384xf32>
    %5 = arith.truncf %4 : vector<32x384xf32> to vector<32x384xbf16>
    %c0_8 = arith.constant 0 : index
    %c0_9 = arith.constant 0 : index
    %6 = vector.load %arg4[%c0_8, %c0_9] : memref<384x192xbf16, #tpu.memory_space<vmem>>, vector<384x192xbf16>
    %cst = arith.constant dense<0.000000e+00> : vector<32x192xf32>
    %7 = tpu.matmul %5, %6, %cst {dimension_numbers = #tpu.dot_dimension_numbers<[1], [0], [0], [1], [0, 0, 1, 1], [], []>} : vector<32x384xbf16>, vector<384x192xbf16>, vector<32x192xf32> -> vector<32x192xf32>
    %c0_10 = arith.constant 0 : index
    %c0_11 = arith.constant 0 : index
    %8 = vector.load %arg5[%c0_10, %c0_11] : memref<1x192xf32, #tpu.memory_space<vmem>>, vector<1x192xf32>
    %9 = vector.broadcast %8 : vector<1x192xf32> to vector<32x192xf32>
    %10 = arith.addf %7, %9 : vector<32x192xf32>
    %11 = vector.shape_cast %10 : vector<32x192xf32> to vector<2x16x192xf32>
    %cst_12 = arith.constant 0.000000e+00 : f32
    %12 = vector.broadcast %cst_12 : f32 to vector<32x128xf32>
    %13 = vector.extract_strided_slice %11 {offsets = [0, 0, 0], sizes = [2, 16, 8], strides = [1, 1, 1]} : vector<2x16x192xf32> to vector<2x16x8xf32>
    %14 = arith.truncf %13 : vector<2x16x8xf32> to vector<2x16x8xbf16>
    %15 = vector.extract_strided_slice %11 {offsets = [0, 0, 64], sizes = [2, 16, 8], strides = [1, 1, 1]} : vector<2x16x192xf32> to vector<2x16x8xf32>
    %16 = arith.truncf %15 : vector<2x16x8xf32> to vector<2x16x8xbf16>
    %17 = vector.extract_strided_slice %11 {offsets = [0, 0, 128], sizes = [2, 16, 8], strides = [1, 1, 1]} : vector<2x16x192xf32> to vector<2x16x8xf32>
    %18 = arith.truncf %17 : vector<2x16x8xf32> to vector<2x16x8xbf16>
    "tpu.trace_start"() <{level = 10 : i32, message = "bqd,bkd->bqk"}> : () -> ()
    %cst_13 = arith.constant dense<0.000000e+00> : vector<2x16x16xf32>
    %19 = tpu.matmul %14, %16, %cst_13 {dimension_numbers = #tpu.dot_dimension_numbers<[2], [2], [1], [1], [0, 0, 0, 1, 1, 1], [0], [0]>} : vector<2x16x8xbf16>, vector<2x16x8xbf16>, vector<2x16x16xf32> -> vector<2x16x16xf32>
    "tpu.trace_stop"() : () -> ()
    %cst_14 = arith.constant dense<0xFF800000> : vector<2x16xf32>
    %20 = vector.multi_reduction <maximumf>, %19, %cst_14 [2] : vector<2x16x16xf32> to vector<2x16xf32>
    %21 = vector.shape_cast %20 : vector<2x16xf32> to vector<2x16x1xf32>
    %22 = vector.broadcast %21 : vector<2x16x1xf32> to vector<2x16x16xf32>
    %23 = arith.subf %19, %22 : vector<2x16x16xf32>
    %24 = math.exp %23 : vector<2x16x16xf32>
    %cst_15 = arith.constant dense<0.000000e+00> : vector<2x16xf32>
    %25 = vector.multi_reduction <add>, %24, %cst_15 [2] : vector<2x16x16xf32> to vector<2x16xf32>
    %26 = vector.shape_cast %25 : vector<2x16xf32> to vector<2x16x1xf32>
    %27 = tpu.reciprocal %26 {approx = true} : vector<2x16x1xf32> -> vector<2x16x1xf32>
    %28 = vector.broadcast %27 : vector<2x16x1xf32> to vector<2x16x16xf32>
    %29 = arith.mulf %24, %28 : vector<2x16x16xf32>
    %30 = arith.truncf %29 : vector<2x16x16xf32> to vector<2x16x16xbf16>
    "tpu.trace_start"() <{level = 10 : i32, message = "bqk,bkd->bqd"}> : () -> ()
    %cst_16 = arith.constant dense<0.000000e+00> : vector<2x16x8xf32>
    %31 = tpu.matmul %30, %18, %cst_16 {dimension_numbers = #tpu.dot_dimension_numbers<[2], [1], [1], [2], [0, 0, 0, 1, 1, 2], [0], [0]>} : vector<2x16x16xbf16>, vector<2x16x8xbf16>, vector<2x16x8xf32> -> vector<2x16x8xf32>
    "tpu.trace_stop"() : () -> ()
    %32 = vector.shape_cast %31 : vector<2x16x8xf32> to vector<32x8xf32>
    %c0_17 = arith.constant 0 : index
    %c0_18 = arith.constant 0 : index
    %c0_19 = arith.constant 0 : index
    %33 = vector.load %arg6[%c0_17, %c0_18, %c0_19] : memref<8x8x128xf32, #tpu.memory_space<vmem>>, vector<1x8x128xf32>
    %34 = vector.shape_cast %33 : vector<1x8x128xf32> to vector<8x128xf32>
    %cst_20 = arith.constant dense<0.000000e+00> : vector<32x128xf32>
    %35 = tpu.matmul %32, %34, %cst_20 {dimension_numbers = #tpu.dot_dimension_numbers<[1], [0], [0], [1], [0, 0, 1, 1], [], []>} : vector<32x8xf32>, vector<8x128xf32>, vector<32x128xf32> -> vector<32x128xf32>
    %36 = arith.addf %12, %35 : vector<32x128xf32>
    %37 = vector.extract_strided_slice %11 {offsets = [0, 0, 8], sizes = [2, 16, 8], strides = [1, 1, 1]} : vector<2x16x192xf32> to vector<2x16x8xf32>
    %38 = arith.truncf %37 : vector<2x16x8xf32> to vector<2x16x8xbf16>
    %39 = vector.extract_strided_slice %11 {offsets = [0, 0, 72], sizes = [2, 16, 8], strides = [1, 1, 1]} : vector<2x16x192xf32> to vector<2x16x8xf32>
    %40 = arith.truncf %39 : vector<2x16x8xf32> to vector<2x16x8xbf16>
    %41 = vector.extract_strided_slice %11 {offsets = [0, 0, 136], sizes = [2, 16, 8], strides = [1, 1, 1]} : vector<2x16x192xf32> to vector<2x16x8xf32>
    %42 = arith.truncf %41 : vector<2x16x8xf32> to vector<2x16x8xbf16>
    "tpu.trace_start"() <{level = 10 : i32, message = "bqd,bkd->bqk"}> : () -> ()
    %cst_21 = arith.constant dense<0.000000e+00> : vector<2x16x16xf32>
    %43 = tpu.matmul %38, %40, %cst_21 {dimension_numbers = #tpu.dot_dimension_numbers<[2], [2], [1], [1], [0, 0, 0, 1, 1, 1], [0], [0]>} : vector<2x16x8xbf16>, vector<2x16x8xbf16>, vector<2x16x16xf32> -> vector<2x16x16xf32>
    "tpu.trace_stop"() : () -> ()
    %cst_22 = arith.constant dense<0xFF800000> : vector<2x16xf32>
    %44 = vector.multi_reduction <maximumf>, %43, %cst_22 [2] : vector<2x16x16xf32> to vector<2x16xf32>
    %45 = vector.shape_cast %44 : vector<2x16xf32> to vector<2x16x1xf32>
    %46 = vector.broadcast %45 : vector<2x16x1xf32> to vector<2x16x16xf32>
    %47 = arith.subf %43, %46 : vector<2x16x16xf32>
    %48 = math.exp %47 : vector<2x16x16xf32>
    %cst_23 = arith.constant dense<0.000000e+00> : vector<2x16xf32>
    %49 = vector.multi_reduction <add>, %48, %cst_23 [2] : vector<2x16x16xf32> to vector<2x16xf32>
    %50 = vector.shape_cast %49 : vector<2x16xf32> to vector<2x16x1xf32>
    %51 = tpu.reciprocal %50 {approx = true} : vector<2x16x1xf32> -> vector<2x16x1xf32>
    %52 = vector.broadcast %51 : vector<2x16x1xf32> to vector<2x16x16xf32>
    %53 = arith.mulf %48, %52 : vector<2x16x16xf32>
    %54 = arith.truncf %53 : vector<2x16x16xf32> to vector<2x16x16xbf16>
    "tpu.trace_start"() <{level = 10 : i32, message = "bqk,bkd->bqd"}> : () -> ()
    %cst_24 = arith.constant dense<0.000000e+00> : vector<2x16x8xf32>
    %55 = tpu.matmul %54, %42, %cst_24 {dimension_numbers = #tpu.dot_dimension_numbers<[2], [1], [1], [2], [0, 0, 0, 1, 1, 2], [0], [0]>} : vector<2x16x16xbf16>, vector<2x16x8xbf16>, vector<2x16x8xf32> -> vector<2x16x8xf32>
    "tpu.trace_stop"() : () -> ()
    %56 = vector.shape_cast %55 : vector<2x16x8xf32> to vector<32x8xf32>
    %c1 = arith.constant 1 : index
    %c0_25 = arith.constant 0 : index
    %c0_26 = arith.constant 0 : index
    %57 = vector.load %arg6[%c1, %c0_25, %c0_26] : memref<8x8x128xf32, #tpu.memory_space<vmem>>, vector<1x8x128xf32>
    %58 = vector.shape_cast %57 : vector<1x8x128xf32> to vector<8x128xf32>
    %cst_27 = arith.constant dense<0.000000e+00> : vector<32x128xf32>
    %59 = tpu.matmul %56, %58, %cst_27 {dimension_numbers = #tpu.dot_dimension_numbers<[1], [0], [0], [1], [0, 0, 1, 1], [], []>} : vector<32x8xf32>, vector<8x128xf32>, vector<32x128xf32> -> vector<32x128xf32>
    %60 = arith.addf %36, %59 : vector<32x128xf32>
    %61 = vector.extract_strided_slice %11 {offsets = [0, 0, 16], sizes = [2, 16, 8], strides = [1, 1, 1]} : vector<2x16x192xf32> to vector<2x16x8xf32>
    %62 = arith.truncf %61 : vector<2x16x8xf32> to vector<2x16x8xbf16>
    %63 = vector.extract_strided_slice %11 {offsets = [0, 0, 80], sizes = [2, 16, 8], strides = [1, 1, 1]} : vector<2x16x192xf32> to vector<2x16x8xf32>
    %64 = arith.truncf %63 : vector<2x16x8xf32> to vector<2x16x8xbf16>
    %65 = vector.extract_strided_slice %11 {offsets = [0, 0, 144], sizes = [2, 16, 8], strides = [1, 1, 1]} : vector<2x16x192xf32> to vector<2x16x8xf32>
    %66 = arith.truncf %65 : vector<2x16x8xf32> to vector<2x16x8xbf16>
    "tpu.trace_start"() <{level = 10 : i32, message = "bqd,bkd->bqk"}> : () -> ()
    %cst_28 = arith.constant dense<0.000000e+00> : vector<2x16x16xf32>
    %67 = tpu.matmul %62, %64, %cst_28 {dimension_numbers = #tpu.dot_dimension_numbers<[2], [2], [1], [1], [0, 0, 0, 1, 1, 1], [0], [0]>} : vector<2x16x8xbf16>, vector<2x16x8xbf16>, vector<2x16x16xf32> -> vector<2x16x16xf32>
    "tpu.trace_stop"() : () -> ()
    %cst_29 = arith.constant dense<0xFF800000> : vector<2x16xf32>
    %68 = vector.multi_reduction <maximumf>, %67, %cst_29 [2] : vector<2x16x16xf32> to vector<2x16xf32>
    %69 = vector.shape_cast %68 : vector<2x16xf32> to vector<2x16x1xf32>
    %70 = vector.broadcast %69 : vector<2x16x1xf32> to vector<2x16x16xf32>
    %71 = arith.subf %67, %70 : vector<2x16x16xf32>
    %72 = math.exp %71 : vector<2x16x16xf32>
    %cst_30 = arith.constant dense<0.000000e+00> : vector<2x16xf32>
    %73 = vector.multi_reduction <add>, %72, %cst_30 [2] : vector<2x16x16xf32> to vector<2x16xf32>
    %74 = vector.shape_cast %73 : vector<2x16xf32> to vector<2x16x1xf32>
    %75 = tpu.reciprocal %74 {approx = true} : vector<2x16x1xf32> -> vector<2x16x1xf32>
    %76 = vector.broadcast %75 : vector<2x16x1xf32> to vector<2x16x16xf32>
    %77 = arith.mulf %72, %76 : vector<2x16x16xf32>
    %78 = arith.truncf %77 : vector<2x16x16xf32> to vector<2x16x16xbf16>
    "tpu.trace_start"() <{level = 10 : i32, message = "bqk,bkd->bqd"}> : () -> ()
    %cst_31 = arith.constant dense<0.000000e+00> : vector<2x16x8xf32>
    %79 = tpu.matmul %78, %66, %cst_31 {dimension_numbers = #tpu.dot_dimension_numbers<[2], [1], [1], [2], [0, 0, 0, 1, 1, 2], [0], [0]>} : vector<2x16x16xbf16>, vector<2x16x8xbf16>, vector<2x16x8xf32> -> vector<2x16x8xf32>
    "tpu.trace_stop"() : () -> ()
    %80 = vector.shape_cast %79 : vector<2x16x8xf32> to vector<32x8xf32>
    %c2 = arith.constant 2 : index
    %c0_32 = arith.constant 0 : index
    %c0_33 = arith.constant 0 : index
    %81 = vector.load %arg6[%c2, %c0_32, %c0_33] : memref<8x8x128xf32, #tpu.memory_space<vmem>>, vector<1x8x128xf32>
    %82 = vector.shape_cast %81 : vector<1x8x128xf32> to vector<8x128xf32>
    %cst_34 = arith.constant dense<0.000000e+00> : vector<32x128xf32>
    %83 = tpu.matmul %80, %82, %cst_34 {dimension_numbers = #tpu.dot_dimension_numbers<[1], [0], [0], [1], [0, 0, 1, 1], [], []>} : vector<32x8xf32>, vector<8x128xf32>, vector<32x128xf32> -> vector<32x128xf32>
    %84 = arith.addf %60, %83 : vector<32x128xf32>
    %85 = vector.extract_strided_slice %11 {offsets = [0, 0, 24], sizes = [2, 16, 8], strides = [1, 1, 1]} : vector<2x16x192xf32> to vector<2x16x8xf32>
    %86 = arith.truncf %85 : vector<2x16x8xf32> to vector<2x16x8xbf16>
    %87 = vector.extract_strided_slice %11 {offsets = [0, 0, 88], sizes = [2, 16, 8], strides = [1, 1, 1]} : vector<2x16x192xf32> to vector<2x16x8xf32>
    %88 = arith.truncf %87 : vector<2x16x8xf32> to vector<2x16x8xbf16>
    %89 = vector.extract_strided_slice %11 {offsets = [0, 0, 152], sizes = [2, 16, 8], strides = [1, 1, 1]} : vector<2x16x192xf32> to vector<2x16x8xf32>
    %90 = arith.truncf %89 : vector<2x16x8xf32> to vector<2x16x8xbf16>
    "tpu.trace_start"() <{level = 10 : i32, message = "bqd,bkd->bqk"}> : () -> ()
    %cst_35 = arith.constant dense<0.000000e+00> : vector<2x16x16xf32>
    %91 = tpu.matmul %86, %88, %cst_35 {dimension_numbers = #tpu.dot_dimension_numbers<[2], [2], [1], [1], [0, 0, 0, 1, 1, 1], [0], [0]>} : vector<2x16x8xbf16>, vector<2x16x8xbf16>, vector<2x16x16xf32> -> vector<2x16x16xf32>
    "tpu.trace_stop"() : () -> ()
    %cst_36 = arith.constant dense<0xFF800000> : vector<2x16xf32>
    %92 = vector.multi_reduction <maximumf>, %91, %cst_36 [2] : vector<2x16x16xf32> to vector<2x16xf32>
    %93 = vector.shape_cast %92 : vector<2x16xf32> to vector<2x16x1xf32>
    %94 = vector.broadcast %93 : vector<2x16x1xf32> to vector<2x16x16xf32>
    %95 = arith.subf %91, %94 : vector<2x16x16xf32>
    %96 = math.exp %95 : vector<2x16x16xf32>
    %cst_37 = arith.constant dense<0.000000e+00> : vector<2x16xf32>
    %97 = vector.multi_reduction <add>, %96, %cst_37 [2] : vector<2x16x16xf32> to vector<2x16xf32>
    %98 = vector.shape_cast %97 : vector<2x16xf32> to vector<2x16x1xf32>
    %99 = tpu.reciprocal %98 {approx = true} : vector<2x16x1xf32> -> vector<2x16x1xf32>
    %100 = vector.broadcast %99 : vector<2x16x1xf32> to vector<2x16x16xf32>
    %101 = arith.mulf %96, %100 : vector<2x16x16xf32>
    %102 = arith.truncf %101 : vector<2x16x16xf32> to vector<2x16x16xbf16>
    "tpu.trace_start"() <{level = 10 : i32, message = "bqk,bkd->bqd"}> : () -> ()
    %cst_38 = arith.constant dense<0.000000e+00> : vector<2x16x8xf32>
    %103 = tpu.matmul %102, %90, %cst_38 {dimension_numbers = #tpu.dot_dimension_numbers<[2], [1], [1], [2], [0, 0, 0, 1, 1, 2], [0], [0]>} : vector<2x16x16xbf16>, vector<2x16x8xbf16>, vector<2x16x8xf32> -> vector<2x16x8xf32>
    "tpu.trace_stop"() : () -> ()
    %104 = vector.shape_cast %103 : vector<2x16x8xf32> to vector<32x8xf32>
    %c3 = arith.constant 3 : index
    %c0_39 = arith.constant 0 : index
    %c0_40 = arith.constant 0 : index
    %105 = vector.load %arg6[%c3, %c0_39, %c0_40] : memref<8x8x128xf32, #tpu.memory_space<vmem>>, vector<1x8x128xf32>
    %106 = vector.shape_cast %105 : vector<1x8x128xf32> to vector<8x128xf32>
    %cst_41 = arith.constant dense<0.000000e+00> : vector<32x128xf32>
    %107 = tpu.matmul %104, %106, %cst_41 {dimension_numbers = #tpu.dot_dimension_numbers<[1], [0], [0], [1], [0, 0, 1, 1], [], []>} : vector<32x8xf32>, vector<8x128xf32>, vector<32x128xf32> -> vector<32x128xf32>
    %108 = arith.addf %84, %107 : vector<32x128xf32>
    %109 = vector.extract_strided_slice %11 {offsets = [0, 0, 32], sizes = [2, 16, 8], strides = [1, 1, 1]} : vector<2x16x192xf32> to vector<2x16x8xf32>
    %110 = arith.truncf %109 : vector<2x16x8xf32> to vector<2x16x8xbf16>
    %111 = vector.extract_strided_slice %11 {offsets = [0, 0, 96], sizes = [2, 16, 8], strides = [1, 1, 1]} : vector<2x16x192xf32> to vector<2x16x8xf32>
    %112 = arith.truncf %111 : vector<2x16x8xf32> to vector<2x16x8xbf16>
    %113 = vector.extract_strided_slice %11 {offsets = [0, 0, 160], sizes = [2, 16, 8], strides = [1, 1, 1]} : vector<2x16x192xf32> to vector<2x16x8xf32>
    %114 = arith.truncf %113 : vector<2x16x8xf32> to vector<2x16x8xbf16>
    "tpu.trace_start"() <{level = 10 : i32, message = "bqd,bkd->bqk"}> : () -> ()
    %cst_42 = arith.constant dense<0.000000e+00> : vector<2x16x16xf32>
    %115 = tpu.matmul %110, %112, %cst_42 {dimension_numbers = #tpu.dot_dimension_numbers<[2], [2], [1], [1], [0, 0, 0, 1, 1, 1], [0], [0]>} : vector<2x16x8xbf16>, vector<2x16x8xbf16>, vector<2x16x16xf32> -> vector<2x16x16xf32>
    "tpu.trace_stop"() : () -> ()
    %cst_43 = arith.constant dense<0xFF800000> : vector<2x16xf32>
    %116 = vector.multi_reduction <maximumf>, %115, %cst_43 [2] : vector<2x16x16xf32> to vector<2x16xf32>
    %117 = vector.shape_cast %116 : vector<2x16xf32> to vector<2x16x1xf32>
    %118 = vector.broadcast %117 : vector<2x16x1xf32> to vector<2x16x16xf32>
    %119 = arith.subf %115, %118 : vector<2x16x16xf32>
    %120 = math.exp %119 : vector<2x16x16xf32>
    %cst_44 = arith.constant dense<0.000000e+00> : vector<2x16xf32>
    %121 = vector.multi_reduction <add>, %120, %cst_44 [2] : vector<2x16x16xf32> to vector<2x16xf32>
    %122 = vector.shape_cast %121 : vector<2x16xf32> to vector<2x16x1xf32>
    %123 = tpu.reciprocal %122 {approx = true} : vector<2x16x1xf32> -> vector<2x16x1xf32>
    %124 = vector.broadcast %123 : vector<2x16x1xf32> to vector<2x16x16xf32>
    %125 = arith.mulf %120, %124 : vector<2x16x16xf32>
    %126 = arith.truncf %125 : vector<2x16x16xf32> to vector<2x16x16xbf16>
    "tpu.trace_start"() <{level = 10 : i32, message = "bqk,bkd->bqd"}> : () -> ()
    %cst_45 = arith.constant dense<0.000000e+00> : vector<2x16x8xf32>
    %127 = tpu.matmul %126, %114, %cst_45 {dimension_numbers = #tpu.dot_dimension_numbers<[2], [1], [1], [2], [0, 0, 0, 1, 1, 2], [0], [0]>} : vector<2x16x16xbf16>, vector<2x16x8xbf16>, vector<2x16x8xf32> -> vector<2x16x8xf32>
    "tpu.trace_stop"() : () -> ()
    %128 = vector.shape_cast %127 : vector<2x16x8xf32> to vector<32x8xf32>
    %c4 = arith.constant 4 : index
    %c0_46 = arith.constant 0 : index
    %c0_47 = arith.constant 0 : index
    %129 = vector.load %arg6[%c4, %c0_46, %c0_47] : memref<8x8x128xf32, #tpu.memory_space<vmem>>, vector<1x8x128xf32>
    %130 = vector.shape_cast %129 : vector<1x8x128xf32> to vector<8x128xf32>
    %cst_48 = arith.constant dense<0.000000e+00> : vector<32x128xf32>
    %131 = tpu.matmul %128, %130, %cst_48 {dimension_numbers = #tpu.dot_dimension_numbers<[1], [0], [0], [1], [0, 0, 1, 1], [], []>} : vector<32x8xf32>, vector<8x128xf32>, vector<32x128xf32> -> vector<32x128xf32>
    %132 = arith.addf %108, %131 : vector<32x128xf32>
    %133 = vector.extract_strided_slice %11 {offsets = [0, 0, 40], sizes = [2, 16, 8], strides = [1, 1, 1]} : vector<2x16x192xf32> to vector<2x16x8xf32>
    %134 = arith.truncf %133 : vector<2x16x8xf32> to vector<2x16x8xbf16>
    %135 = vector.extract_strided_slice %11 {offsets = [0, 0, 104], sizes = [2, 16, 8], strides = [1, 1, 1]} : vector<2x16x192xf32> to vector<2x16x8xf32>
    %136 = arith.truncf %135 : vector<2x16x8xf32> to vector<2x16x8xbf16>
    %137 = vector.extract_strided_slice %11 {offsets = [0, 0, 168], sizes = [2, 16, 8], strides = [1, 1, 1]} : vector<2x16x192xf32> to vector<2x16x8xf32>
    %138 = arith.truncf %137 : vector<2x16x8xf32> to vector<2x16x8xbf16>
    "tpu.trace_start"() <{level = 10 : i32, message = "bqd,bkd->bqk"}> : () -> ()
    %cst_49 = arith.constant dense<0.000000e+00> : vector<2x16x16xf32>
    %139 = tpu.matmul %134, %136, %cst_49 {dimension_numbers = #tpu.dot_dimension_numbers<[2], [2], [1], [1], [0, 0, 0, 1, 1, 1], [0], [0]>} : vector<2x16x8xbf16>, vector<2x16x8xbf16>, vector<2x16x16xf32> -> vector<2x16x16xf32>
    "tpu.trace_stop"() : () -> ()
    %cst_50 = arith.constant dense<0xFF800000> : vector<2x16xf32>
    %140 = vector.multi_reduction <maximumf>, %139, %cst_50 [2] : vector<2x16x16xf32> to vector<2x16xf32>
    %141 = vector.shape_cast %140 : vector<2x16xf32> to vector<2x16x1xf32>
    %142 = vector.broadcast %141 : vector<2x16x1xf32> to vector<2x16x16xf32>
    %143 = arith.subf %139, %142 : vector<2x16x16xf32>
    %144 = math.exp %143 : vector<2x16x16xf32>
    %cst_51 = arith.constant dense<0.000000e+00> : vector<2x16xf32>
    %145 = vector.multi_reduction <add>, %144, %cst_51 [2] : vector<2x16x16xf32> to vector<2x16xf32>
    %146 = vector.shape_cast %145 : vector<2x16xf32> to vector<2x16x1xf32>
    %147 = tpu.reciprocal %146 {approx = true} : vector<2x16x1xf32> -> vector<2x16x1xf32>
    %148 = vector.broadcast %147 : vector<2x16x1xf32> to vector<2x16x16xf32>
    %149 = arith.mulf %144, %148 : vector<2x16x16xf32>
    %150 = arith.truncf %149 : vector<2x16x16xf32> to vector<2x16x16xbf16>
    "tpu.trace_start"() <{level = 10 : i32, message = "bqk,bkd->bqd"}> : () -> ()
    %cst_52 = arith.constant dense<0.000000e+00> : vector<2x16x8xf32>
    %151 = tpu.matmul %150, %138, %cst_52 {dimension_numbers = #tpu.dot_dimension_numbers<[2], [1], [1], [2], [0, 0, 0, 1, 1, 2], [0], [0]>} : vector<2x16x16xbf16>, vector<2x16x8xbf16>, vector<2x16x8xf32> -> vector<2x16x8xf32>
    "tpu.trace_stop"() : () -> ()
    %152 = vector.shape_cast %151 : vector<2x16x8xf32> to vector<32x8xf32>
    %c5 = arith.constant 5 : index
    %c0_53 = arith.constant 0 : index
    %c0_54 = arith.constant 0 : index
    %153 = vector.load %arg6[%c5, %c0_53, %c0_54] : memref<8x8x128xf32, #tpu.memory_space<vmem>>, vector<1x8x128xf32>
    %154 = vector.shape_cast %153 : vector<1x8x128xf32> to vector<8x128xf32>
    %cst_55 = arith.constant dense<0.000000e+00> : vector<32x128xf32>
    %155 = tpu.matmul %152, %154, %cst_55 {dimension_numbers = #tpu.dot_dimension_numbers<[1], [0], [0], [1], [0, 0, 1, 1], [], []>} : vector<32x8xf32>, vector<8x128xf32>, vector<32x128xf32> -> vector<32x128xf32>
    %156 = arith.addf %132, %155 : vector<32x128xf32>
    %157 = vector.extract_strided_slice %11 {offsets = [0, 0, 48], sizes = [2, 16, 8], strides = [1, 1, 1]} : vector<2x16x192xf32> to vector<2x16x8xf32>
    %158 = arith.truncf %157 : vector<2x16x8xf32> to vector<2x16x8xbf16>
    %159 = vector.extract_strided_slice %11 {offsets = [0, 0, 112], sizes = [2, 16, 8], strides = [1, 1, 1]} : vector<2x16x192xf32> to vector<2x16x8xf32>
    %160 = arith.truncf %159 : vector<2x16x8xf32> to vector<2x16x8xbf16>
    %161 = vector.extract_strided_slice %11 {offsets = [0, 0, 176], sizes = [2, 16, 8], strides = [1, 1, 1]} : vector<2x16x192xf32> to vector<2x16x8xf32>
    %162 = arith.truncf %161 : vector<2x16x8xf32> to vector<2x16x8xbf16>
    "tpu.trace_start"() <{level = 10 : i32, message = "bqd,bkd->bqk"}> : () -> ()
    %cst_56 = arith.constant dense<0.000000e+00> : vector<2x16x16xf32>
    %163 = tpu.matmul %158, %160, %cst_56 {dimension_numbers = #tpu.dot_dimension_numbers<[2], [2], [1], [1], [0, 0, 0, 1, 1, 1], [0], [0]>} : vector<2x16x8xbf16>, vector<2x16x8xbf16>, vector<2x16x16xf32> -> vector<2x16x16xf32>
    "tpu.trace_stop"() : () -> ()
    %cst_57 = arith.constant dense<0xFF800000> : vector<2x16xf32>
    %164 = vector.multi_reduction <maximumf>, %163, %cst_57 [2] : vector<2x16x16xf32> to vector<2x16xf32>
    %165 = vector.shape_cast %164 : vector<2x16xf32> to vector<2x16x1xf32>
    %166 = vector.broadcast %165 : vector<2x16x1xf32> to vector<2x16x16xf32>
    %167 = arith.subf %163, %166 : vector<2x16x16xf32>
    %168 = math.exp %167 : vector<2x16x16xf32>
    %cst_58 = arith.constant dense<0.000000e+00> : vector<2x16xf32>
    %169 = vector.multi_reduction <add>, %168, %cst_58 [2] : vector<2x16x16xf32> to vector<2x16xf32>
    %170 = vector.shape_cast %169 : vector<2x16xf32> to vector<2x16x1xf32>
    %171 = tpu.reciprocal %170 {approx = true} : vector<2x16x1xf32> -> vector<2x16x1xf32>
    %172 = vector.broadcast %171 : vector<2x16x1xf32> to vector<2x16x16xf32>
    %173 = arith.mulf %168, %172 : vector<2x16x16xf32>
    %174 = arith.truncf %173 : vector<2x16x16xf32> to vector<2x16x16xbf16>
    "tpu.trace_start"() <{level = 10 : i32, message = "bqk,bkd->bqd"}> : () -> ()
    %cst_59 = arith.constant dense<0.000000e+00> : vector<2x16x8xf32>
    %175 = tpu.matmul %174, %162, %cst_59 {dimension_numbers = #tpu.dot_dimension_numbers<[2], [1], [1], [2], [0, 0, 0, 1, 1, 2], [0], [0]>} : vector<2x16x16xbf16>, vector<2x16x8xbf16>, vector<2x16x8xf32> -> vector<2x16x8xf32>
    "tpu.trace_stop"() : () -> ()
    %176 = vector.shape_cast %175 : vector<2x16x8xf32> to vector<32x8xf32>
    %c6 = arith.constant 6 : index
    %c0_60 = arith.constant 0 : index
    %c0_61 = arith.constant 0 : index
    %177 = vector.load %arg6[%c6, %c0_60, %c0_61] : memref<8x8x128xf32, #tpu.memory_space<vmem>>, vector<1x8x128xf32>
    %178 = vector.shape_cast %177 : vector<1x8x128xf32> to vector<8x128xf32>
    %cst_62 = arith.constant dense<0.000000e+00> : vector<32x128xf32>
    %179 = tpu.matmul %176, %178, %cst_62 {dimension_numbers = #tpu.dot_dimension_numbers<[1], [0], [0], [1], [0, 0, 1, 1], [], []>} : vector<32x8xf32>, vector<8x128xf32>, vector<32x128xf32> -> vector<32x128xf32>
    %180 = arith.addf %156, %179 : vector<32x128xf32>
    %181 = vector.extract_strided_slice %11 {offsets = [0, 0, 56], sizes = [2, 16, 8], strides = [1, 1, 1]} : vector<2x16x192xf32> to vector<2x16x8xf32>
    %182 = arith.truncf %181 : vector<2x16x8xf32> to vector<2x16x8xbf16>
    %183 = vector.extract_strided_slice %11 {offsets = [0, 0, 120], sizes = [2, 16, 8], strides = [1, 1, 1]} : vector<2x16x192xf32> to vector<2x16x8xf32>
    %184 = arith.truncf %183 : vector<2x16x8xf32> to vector<2x16x8xbf16>
    %185 = vector.extract_strided_slice %11 {offsets = [0, 0, 184], sizes = [2, 16, 8], strides = [1, 1, 1]} : vector<2x16x192xf32> to vector<2x16x8xf32>
    %186 = arith.truncf %185 : vector<2x16x8xf32> to vector<2x16x8xbf16>
    "tpu.trace_start"() <{level = 10 : i32, message = "bqd,bkd->bqk"}> : () -> ()
    %cst_63 = arith.constant dense<0.000000e+00> : vector<2x16x16xf32>
    %187 = tpu.matmul %182, %184, %cst_63 {dimension_numbers = #tpu.dot_dimension_numbers<[2], [2], [1], [1], [0, 0, 0, 1, 1, 1], [0], [0]>} : vector<2x16x8xbf16>, vector<2x16x8xbf16>, vector<2x16x16xf32> -> vector<2x16x16xf32>
    "tpu.trace_stop"() : () -> ()
    %cst_64 = arith.constant dense<0xFF800000> : vector<2x16xf32>
    %188 = vector.multi_reduction <maximumf>, %187, %cst_64 [2] : vector<2x16x16xf32> to vector<2x16xf32>
    %189 = vector.shape_cast %188 : vector<2x16xf32> to vector<2x16x1xf32>
    %190 = vector.broadcast %189 : vector<2x16x1xf32> to vector<2x16x16xf32>
    %191 = arith.subf %187, %190 : vector<2x16x16xf32>
    %192 = math.exp %191 : vector<2x16x16xf32>
    %cst_65 = arith.constant dense<0.000000e+00> : vector<2x16xf32>
    %193 = vector.multi_reduction <add>, %192, %cst_65 [2] : vector<2x16x16xf32> to vector<2x16xf32>
    %194 = vector.shape_cast %193 : vector<2x16xf32> to vector<2x16x1xf32>
    %195 = tpu.reciprocal %194 {approx = true} : vector<2x16x1xf32> -> vector<2x16x1xf32>
    %196 = vector.broadcast %195 : vector<2x16x1xf32> to vector<2x16x16xf32>
    %197 = arith.mulf %192, %196 : vector<2x16x16xf32>
    %198 = arith.truncf %197 : vector<2x16x16xf32> to vector<2x16x16xbf16>
    "tpu.trace_start"() <{level = 10 : i32, message = "bqk,bkd->bqd"}> : () -> ()
    %cst_66 = arith.constant dense<0.000000e+00> : vector<2x16x8xf32>
    %199 = tpu.matmul %198, %186, %cst_66 {dimension_numbers = #tpu.dot_dimension_numbers<[2], [1], [1], [2], [0, 0, 0, 1, 1, 2], [0], [0]>} : vector<2x16x16xbf16>, vector<2x16x8xbf16>, vector<2x16x8xf32> -> vector<2x16x8xf32>
    "tpu.trace_stop"() : () -> ()
    %200 = vector.shape_cast %199 : vector<2x16x8xf32> to vector<32x8xf32>
    %c7 = arith.constant 7 : index
    %c0_67 = arith.constant 0 : index
    %c0_68 = arith.constant 0 : index
    %201 = vector.load %arg6[%c7, %c0_67, %c0_68] : memref<8x8x128xf32, #tpu.memory_space<vmem>>, vector<1x8x128xf32>
    %202 = vector.shape_cast %201 : vector<1x8x128xf32> to vector<8x128xf32>
    %cst_69 = arith.constant dense<0.000000e+00> : vector<32x128xf32>
    %203 = tpu.matmul %200, %202, %cst_69 {dimension_numbers = #tpu.dot_dimension_numbers<[1], [0], [0], [1], [0, 0, 1, 1], [], []>} : vector<32x8xf32>, vector<8x128xf32>, vector<32x128xf32> -> vector<32x128xf32>
    %204 = arith.addf %180, %203 : vector<32x128xf32>
    %c0_70 = arith.constant 0 : index
    %c0_71 = arith.constant 0 : index
    %205 = vector.load %arg7[%c0_70, %c0_71] : memref<1x128xf32, #tpu.memory_space<vmem>>, vector<1x128xf32>
    %206 = vector.broadcast %205 : vector<1x128xf32> to vector<32x128xf32>
    %207 = arith.addf %204, %206 : vector<32x128xf32>
    %208 = vector.shape_cast %207 : vector<32x128xf32> to vector<2x16x128xf32>
    %c0_72 = arith.constant 0 : index
    %c0_73 = arith.constant 0 : index
    %c0_74 = arith.constant 0 : index
    %209 = vector.load %arg8[%c0_72, %c0_73, %c0_74] : memref<2x16x128xf32, #tpu.memory_space<vmem>>, vector<2x16x128xf32>
    tpu.vector_store %arg8[%c0_72, %c0_73, %c0_74], %208 {strides = array<i32>} : memref<2x16x128xf32, #tpu.memory_space<vmem>>, vector<2x16x128xf32>,
    return
  }
  func.func @transform_0(%arg0: i32) -> (i32, i32, i32) {
    %c0_i32 = arith.constant 0 : i32
    %c0_i32_0 = arith.constant 0 : i32
    %c0_i32_1 = arith.constant 0 : i32
    return %arg0, %c0_i32, %c0_i32_0 : i32, i32, i32
  }
  func.func @transform_1(%arg0: i32) -> (i32, i32, i32) {
    %c0_i32 = arith.constant 0 : i32
    %c0_i32_0 = arith.constant 0 : i32
    %c0_i32_1 = arith.constant 0 : i32
    return %arg0, %c0_i32, %c0_i32_0 : i32, i32, i32
  }
  func.func @transform_2(%arg0: i32) -> (i32, i32, i32) {
    %c0_i32 = arith.constant 0 : i32
    %c0_i32_0 = arith.constant 0 : i32
    %c0_i32_1 = arith.constant 0 : i32
    return %arg0, %c0_i32, %c0_i32_0 : i32, i32, i32
  }
  func.func @transform_3(%arg0: i32) -> (i32, i32) {
    %c0_i32 = arith.constant 0 : i32
    %c0_i32_0 = arith.constant 0 : i32
    %c0_i32_1 = arith.constant 0 : i32
    return %c0_i32, %c0_i32_0 : i32, i32
  }
  func.func @transform_4(%arg0: i32) -> (i32, i32) {
    %c0_i32 = arith.constant 0 : i32
    %c0_i32_0 = arith.constant 0 : i32
    %c0_i32_1 = arith.constant 0 : i32
    return %c0_i32, %c0_i32_0 : i32, i32
  }
  func.func @transform_5(%arg0: i32) -> (i32, i32, i32) {
    %c0_i32 = arith.constant 0 : i32
    %c0_i32_0 = arith.constant 0 : i32
    %c0_i32_1 = arith.constant 0 : i32
    %c0_i32_2 = arith.constant 0 : i32
    return %c0_i32, %c0_i32_0, %c0_i32_1 : i32, i32, i32
  }
  func.func @transform_6(%arg0: i32) -> (i32, i32) {
    %c0_i32 = arith.constant 0 : i32
    %c0_i32_0 = arith.constant 0 : i32
    %c0_i32_1 = arith.constant 0 : i32
    return %c0_i32, %c0_i32_0 : i32, i32
  }
  func.func @transform_7(%arg0: i32) -> (i32, i32, i32) {
    %c0_i32 = arith.constant 0 : i32
    %c0_i32_0 = arith.constant 0 : i32
    %c0_i32_1 = arith.constant 0 : i32
    return %arg0, %c0_i32, %c0_i32_0 : i32, i32, i32
  }
}

</mosaic_0001>

<bundles_post_ra>
// kernel: tpu_custom_call.1
= control target key start
LH: loop header
LB: loop body
LE: loop exit
PB: predicated region body
PF: predicated region fallthrough
CT: control target
= control target key end

     0   :  { %s3282_s0 = inlined_call_operand.vmem [shape: f32[2,16,128], index: 0, kind: input, shape index: {}]   ;;  %s3283_s1 = inlined_call_operand.vmem [shape: f32[2,16,128], index: 1, kind: input, shape index: {}]   ;;  %s3284_s2 = inlined_call_operand.vmem [shape: f32[2,16,128], index: 2, kind: input, shape index: {}]   ;;  %s3285_s3 = inlined_call_operand.vmem [shape: bf16[384,192], index: 3, kind: input, shape index: {}]   ;;  %s3286_s4 = inlined_call_operand.vmem [shape: f32[1,192], index: 4, kind: input, shape index: {}]   ;;  %s3287_s5 = inlined_call_operand.vmem [shape: f32[8,8,128], index: 5, kind: input, shape index: {}]   ;;  %s3288_s6 = inlined_call_operand.vmem [shape: f32[1,128], index: 6, kind: input, shape index: {}]   ;;  %s3289_s7 = inlined_call_operand.hbm [shape: f32[2,16,128], index: 7, kind: output, shape index: {}]  }
   0x1   :  { %v2099_v0 = vld [vmem:[%s3285_s3 + $0x70] sm:$0xf]  ;;  %v2319_v1 = vld [vmem:[%s3285_s3 + $0x74] sm:$0xf0]  ;;  %v2091_v9 = vld [vmem:[%s3285_s3 + $0x60] sm:$0xf] }
   0x2   :  { %v2163_v2 = vld [vmem:[%s3285_s3 + $0xf0] sm:$0xf]  ;;  %v2100_v3 = vor.u32 %v2319_v1, %v2099_v0  ;;  %v2335_v4 = vld [vmem:[%s3285_s3 + $0xf4] sm:$0xf0]  ;;  %v2317_v10 = vld [vmem:[%s3285_s3 + $0x64] sm:$0xf0] }
   0x3   :  { %v2227_v5 = vld [vmem:[%s3285_s3 + $0x170] sm:$0xf]  ;;  %v2351_v6 = vld [vmem:[%s3285_s3 + $0x174] sm:$0xf0]  ;;  %v2164_v7 = vor.u32 %v2335_v4, %v2163_v2  ;;  %v2155_v11 = vld [vmem:[%s3285_s3 + $0xe0] sm:$0xf]  ;;  %v2092_v12 = vor.u32 %v2317_v10, %v2091_v9 }
   0x4   :  { %v2228_v8 = vor.u32 %v2351_v6, %v2227_v5  ;;  %340 = vmatpush.bf16.msra.mxu0 %v2100_v3  ;;  %v2333_v13 = vld [vmem:[%s3285_s3 + $0xe4] sm:$0xf0]  ;;  %v2219_v14 = vld [vmem:[%s3285_s3 + $0x160] sm:$0xf]  ;;  %v2083_v18 = vld [vmem:[%s3285_s3 + $0x50] sm:$0xf] }
   0x5   :  { %v2349_v15 = vld [vmem:[%s3285_s3 + $0x164] sm:$0xf0]  ;;  %359 = vmatpush.bf16.msra.mxu1 %v2164_v7  ;;  %v2156_v16 = vor.u32 %v2333_v13, %v2155_v11  ;;  %v2315_v19 = vld [vmem:[%s3285_s3 + $0x54] sm:$0xf0]  ;;  %v2147_v20 = vld [vmem:[%s3285_s3 + $0xd0] sm:$0xf] }
   0x6   :  { %378 = vmatpush.bf16.msra.mxu2 %v2228_v8  ;;  %v2220_v17 = vor.u32 %v2349_v15, %v2219_v14  ;;  %v2331_v21 = vld [vmem:[%s3285_s3 + $0xd4] sm:$0xf0]  ;;  %v2211_v22 = vld [vmem:[%s3285_s3 + $0x150] sm:$0xf]  ;;  %v2084_v24 = vor.u32 %v2315_v19, %v2083_v18  ;;  %v2075_v27 = vld [vmem:[%s3285_s3 + $0x40] sm:$0xf] }
   0x7   :  { %v2347_v23 = vld [vmem:[%s3285_s3 + $0x154] sm:$0xf0]  ;;  %v2148_v25 = vor.u32 %v2331_v21, %v2147_v20  ;;  %v2313_v28 = vld [vmem:[%s3285_s3 + $0x44] sm:$0xf0]  ;;  %v2139_v29 = vld [vmem:[%s3285_s3 + $0xc0] sm:$0xf] }
   0x8   :  { %341 = vmatpush.bf16.msra.mxu0 %v2092_v12  ;;  %v2212_v26 = vor.u32 %v2347_v23, %v2211_v22  ;;  %v2329_v30 = vld [vmem:[%s3285_s3 + $0xc4] sm:$0xf0]  ;;  %v2203_v31 = vld [vmem:[%s3285_s3 + $0x140] sm:$0xf]  ;;  %v2076_v33 = vor.u32 %v2313_v28, %v2075_v27  ;;  %v2067_v36 = vld [vmem:[%s3285_s3 + $0x30] sm:$0xf] }
   0x9   :  { %360 = vmatpush.bf16.msra.mxu1 %v2156_v16  ;;  %v2345_v32 = vld [vmem:[%s3285_s3 + $0x144] sm:$0xf0]  ;;  %v2140_v34 = vor.u32 %v2329_v30, %v2139_v29  ;;  %v2311_v37 = vld [vmem:[%s3285_s3 + $0x34] sm:$0xf0]  ;;  %v2131_v38 = vld [vmem:[%s3285_s3 + $0xb0] sm:$0xf] }
   0xa   :  { %379 = vmatpush.bf16.msra.mxu2 %v2220_v17  ;;  %v2204_v35 = vor.u32 %v2345_v32, %v2203_v31  ;;  %v2327_v39 = vld [vmem:[%s3285_s3 + $0xb4] sm:$0xf0]  ;;  %v2195_v40 = vld [vmem:[%s3285_s3 + $0x130] sm:$0xf]  ;;  %v2068_v42 = vor.u32 %v2311_v37, %v2067_v36  ;;  %v2059_v45 = vld [vmem:[%s3285_s3 + $0x20] sm:$0xf] }
   0xb   :  { %v2343_v41 = vld [vmem:[%s3285_s3 + $0x134] sm:$0xf0]  ;;  %v2132_v43 = vor.u32 %v2327_v39, %v2131_v38  ;;  %v2309_v46 = vld [vmem:[%s3285_s3 + $0x24] sm:$0xf0]  ;;  %v2123_v47 = vld [vmem:[%s3285_s3 + $0xa0] sm:$0xf] }
   0xc   :  { %342 = vmatpush.bf16.msra.mxu0 %v2084_v24  ;;  %v2196_v44 = vor.u32 %v2343_v41, %v2195_v40  ;;  %v2325_v48 = vld [vmem:[%s3285_s3 + $0xa4] sm:$0xf0]  ;;  %v2187_v49 = vld [vmem:[%s3285_s3 + $0x120] sm:$0xf]  ;;  %v2060_v51 = vor.u32 %v2309_v46, %v2059_v45  ;;  %v2051_v52 = vld [vmem:[%s3285_s3 + $0x10] sm:$0xf] }
   0xd   :  { %361 = vmatpush.bf16.msra.mxu1 %v2148_v25  ;;  %v2341_v50 = vld [vmem:[%s3285_s3 + $0x124] sm:$0xf0]  ;;  %v2307_v53 = vld [vmem:[%s3285_s3 + $0x14] sm:$0xf0]  ;;  %v2124_v54 = vor.u32 %v2325_v48, %v2123_v47  ;;  %v2115_v56 = vld [vmem:[%s3285_s3 + $0x90] sm:$0xf] }
   0xe   :  { %380 = vmatpush.bf16.msra.mxu2 %v2212_v26  ;;  %v2188_v55 = vor.u32 %v2341_v50, %v2187_v49 }
  0x10   :  { %343 = vmatpush.bf16.msra.mxu0 %v2076_v33 }
  0x11   :  { %362 = vmatpush.bf16.msra.mxu1 %v2140_v34 }
  0x12   :  { %381 = vmatpush.bf16.msra.mxu2 %v2204_v35 }
  0x14   :  { %344 = vmatpush.bf16.msra.mxu0 %v2068_v42 }
  0x15   :  { %363 = vmatpush.bf16.msra.mxu1 %v2132_v43 }
  0x16   :  { %382 = vmatpush.bf16.msra.mxu2 %v2196_v44 }
  0x17   :  { %12 = vsyncpa [#allocation3], 0  ;;  %v2323_v57 = vld [vmem:[%s3285_s3 + $0x94] sm:$0xf0]  ;;  %v2179_v58 = vld [vmem:[%s3285_s3 + $0x110] sm:$0xf]  ;;  %v2052_v60 = vor.u32 %v2307_v53, %v2051_v52 }
  0x18   :  { %v2339_v59 = vld [vmem:[%s3285_s3 + $0x114] sm:$0xf0]  ;;  %345 = vmatpush.bf16.msra.mxu0 %v2060_v51  ;;  %v2116_v61 = vor.u32 %v2323_v57, %v2115_v56  ;;  %v2043_v63 = vld [vmem:[%s3285_s3] sm:$0xf]  ;;  %v2305_v0 = vld [vmem:[%s3285_s3 + $0x4] sm:$0xf0] }
  0x19   :  { %364 = vmatpush.bf16.msra.mxu1 %v2124_v54  ;;  %v2180_v62 = vor.u32 %v2339_v59, %v2179_v58  ;;  %v2107_v1 = vld [vmem:[%s3285_s3 + $0x80] sm:$0xf]  ;;  %v2321_v2 = vld [vmem:[%s3285_s3 + $0x84] sm:$0xf0]  ;;  %v2044_v5 = vor.u32 %v2305_v0, %v2043_v63  ;;  %v38_v17 = vld [vmem:[%s3284_s2 + $0x10] sm:$0xff]  ;;  %s2524_s30 = smov 120  }
  0x1a   :  { %383 = vmatpush.bf16.msra.mxu2 %v2188_v55  ;;  %v2171_v3 = vld [vmem:[%s3285_s3 + $0x100] sm:$0xf]  ;;  %v2337_v4 = vld [vmem:[%s3285_s3 + $0x104] sm:$0xf0]  ;;  %v2108_v9 = vor.u32 %v2321_v2, %v2107_v1  ;;  %v30_v18 = vld [vmem:[%s3282_s0 + $0x10] sm:$0xff]  ;;  %s2525_s8 = smov 56  }
  0x1b   :  { %v28_v6 = vld [vmem:[%s3282_s0] sm:$0xff]  ;;  %v29_v7 = vld [vmem:[%s3282_s0 + $0x8] sm:$0xff]  ;;  %v2172_v10 = vor.u32 %v2337_v4, %v2171_v3  ;;  %v31_v19 = vld [vmem:[%s3282_s0 + $0x18] sm:$0xff]  ;;  %vm469_vm0 = vcmask 64512   ;;  %vm517_vm1 = vcmask 130048   ;;  %s2528_s23 = smov 40  }
  0x1c   :  { %346 = vmatpush.bf16.msra.mxu0 %v2052_v60  ;;  %v32_v8 = vld [vmem:[%s3283_s1] sm:$0xff]  ;;  %v33_v11 = vld [vmem:[%s3283_s1 + $0x8] sm:$0xff]  ;;  %v2743_v14 = vpack.c.bf16 %v29_v7, %v28_v6  ;;  %v39_v20 = vld [vmem:[%s3284_s2 + $0x18] sm:$0xff]  ;;  %v2770_v23 = vpack.c.bf16 %v31_v19, %v30_v18  ;;  %s2529_s24 = smov 112   ;;  %s2530_s25 = smov 104  }
  0x1d   :  { %365 = vmatpush.bf16.msra.mxu1 %v2116_v61  ;;  %v36_v12 = vld [vmem:[%s3284_s2] sm:$0xff]  ;;  %v37_v13 = vld [vmem:[%s3284_s2 + $0x8] sm:$0xff]  ;;  %v2745_v15 = vpack.c.bf16 %v33_v11, %v32_v8  ;;  %v34_v21 = vld [vmem:[%s3283_s1 + $0x10] sm:$0xff]  ;;  %v2772_v24 = vpack.c.bf16 %v39_v20, %v38_v17  ;;  %s2531_s0 = smov 32   ;;  %s2532_s2 = smov 96  }
  0x1e   :  { %384 = vmatpush.bf16.msra.mxu2 %v2180_v62  ;;  %v2747_v16 = vpack.c.bf16 %v37_v13, %v36_v12  ;;  %v35_v22 = vld [vmem:[%s3283_s1 + $0x18] sm:$0xff]  ;;  %v2782_v26 = vld [vmem:[%s3286_s4] sm:$0x3]  ;;  %v2318_v35 = vld [vmem:[%s3285_s3 + $0x74] sm:$0xf]  ;;  %s2526_s4 = smov 64  }
  0x1f   :  { %v2774_v25 = vpack.c.bf16 %v35_v22, %v34_v21  ;;  %v2785_v27 = vperm.slane %v2782_v26, 0  ;;  %v2101_v36 = vld [vmem:[%s3285_s3 + $0x78] sm:$0xf0]  ;;  %v2334_v37 = vld [vmem:[%s3285_s3 + $0xf4] sm:$0xf]  ;;  %s2533_s11 = smov 88  }
  0x20   :  { %347 = vmatpush.bf16.msra.mxu0 %v2044_v5  ;;  %v2104_v39 = vor.u32 %v2318_v35, %v2101_v36  ;;  %v2165_v40 = vld [vmem:[%s3285_s3 + $0xf8] sm:$0xf0]  ;;  %v2316_v41 = vld [vmem:[%s3285_s3 + $0x64] sm:$0xf]  ;;  %v2093_v42 = vld [vmem:[%s3285_s3 + $0x68] sm:$0xf0] }
  0x21   :  { %366 = vmatpush.bf16.msra.mxu1 %v2108_v9  ;;  %v2168_v43 = vor.u32 %v2334_v37, %v2165_v40  ;;  %v2332_v44 = vld [vmem:[%s3285_s3 + $0xe4] sm:$0xf]  ;;  %v2157_v45 = vld [vmem:[%s3285_s3 + $0xe8] sm:$0xf0]  ;;  %v2096_v47 = vor.u32 %v2316_v41, %v2093_v42  ;;  %v2314_v49 = vld [vmem:[%s3285_s3 + $0x54] sm:$0xf] }
  0x22   :  { %385 = vmatpush.bf16.msra.mxu2 %v2172_v10  ;;  %397 = vmatpush.bf16.msra.mxu3 %v2104_v39  ;;  %v2160_v48 = vor.u32 %v2332_v44, %v2157_v45  ;;  %v2085_v50 = vld [vmem:[%s3285_s3 + $0x58] sm:$0xf0]  ;;  %v2330_v51 = vld [vmem:[%s3285_s3 + $0xd4] sm:$0xf]  ;;  %v2348_v62 = vld [vmem:[%s3285_s3 + $0x164] sm:$0xf] }
  0x23   :  { %348 = vmatmul.bf16.vlgmr.msra.gmra.mxu0 %v2743_v14  ;;  %v2149_v53 = vld [vmem:[%s3285_s3 + $0xd8] sm:$0xf0]  ;;  %v2350_v54 = vld [vmem:[%s3285_s3 + $0x174] sm:$0xf]  ;;  %v2088_v61 = vor.u32 %v2314_v49, %v2085_v50  ;;  %v2221_v63 = vld [vmem:[%s3285_s3 + $0x168] sm:$0xf0] }
  0x24   :  { %367 = vmatmul.bf16.vlgmr.msra.gmra.mxu1 %v2745_v15  ;;  %416 = vmatpush.bf16.msrb.mxu0 %v2168_v43  ;;  %v2229_v55 = vld [vmem:[%s3285_s3 + $0x178] sm:$0xf0]  ;;  %v2152_v0 = vor.u32 %v2330_v51, %v2149_v53  ;;  %v2224_v1 = vor.u32 %v2348_v62, %v2221_v63  ;;  %v2312_v3 = vld [vmem:[%s3285_s3 + $0x44] sm:$0xf]  ;;  %v2077_v4 = vld [vmem:[%s3285_s3 + $0x48] sm:$0xf0] }
  0x25   :  { %386 = vmatmul.bf16.vlgmr.msra.gmra.mxu2 %v2747_v16  ;;  %v2232_v57 = vor.u32 %v2350_v54, %v2229_v55  ;;  %v2328_v5 = vld [vmem:[%s3285_s3 + $0xc4] sm:$0xf]  ;;  %v2141_v7 = vld [vmem:[%s3285_s3 + $0xc8] sm:$0xf0]  ;;  %v2346_v8 = vld [vmem:[%s3285_s3 + $0x154] sm:$0xf]  ;;  %v2080_v13 = vor.u32 %v2312_v3, %v2077_v4 }
  0x26   :  { %398 = vmatpush.bf16.msra.mxu3 %v2096_v47  ;;  %v2213_v9 = vld [vmem:[%s3285_s3 + $0x158] sm:$0xf0]  ;;  %v2144_v18 = vor.u32 %v2328_v5, %v2141_v7  ;;  %v2310_v19 = vld [vmem:[%s3285_s3 + $0x34] sm:$0xf]  ;;  %v2308_v37 = vld [vmem:[%s3285_s3 + $0x24] sm:$0xf] }
  0x27   :  { %435 = vmatpush.bf16.msrb.mxu1 %v2232_v57  ;;  %v2069_v20 = vld [vmem:[%s3285_s3 + $0x38] sm:$0xf0]  ;;  %v2326_v21 = vld [vmem:[%s3285_s3 + $0xb4] sm:$0xf]  ;;  %v2216_v22 = vor.u32 %v2346_v8, %v2213_v9  ;;  %v2324_v39 = vld [vmem:[%s3285_s3 + $0xa4] sm:$0xf] }
  0x28   :  { %417 = vmatpush.bf16.msrb.mxu0 %v2160_v48  ;;  %v2342_v41 = vld [vmem:[%s3285_s3 + $0x134] sm:$0xf]  ;;  %v2197_v42 = vld [vmem:[%s3285_s3 + $0x138] sm:$0xf0]  ;;  %v2109_v62 = vld [vmem:[%s3285_s3 + $0x88] sm:$0xf0] }
  0x29   :  { %v2306_v48 = vld [vmem:[%s3285_s3 + $0x14] sm:$0xf]  ;;  %v2053_v49 = vld [vmem:[%s3285_s3 + $0x18] sm:$0xf0]  ;;  %v2200_v50 = vor.u32 %v2342_v41, %v2197_v42  ;;  %v2340_v4 = vld [vmem:[%s3285_s3 + $0x124] sm:$0xf] }
  0x2a   :  { %399 = vmatpush.bf16.msra.mxu3 %v2088_v61  ;;  %v2117_v53 = vld [vmem:[%s3285_s3 + $0x98] sm:$0xf0]  ;;  %v2320_v61 = vld [vmem:[%s3285_s3 + $0x84] sm:$0xf]  ;;  %v2189_v5 = vld [vmem:[%s3285_s3 + $0x128] sm:$0xf0] }
  0x2b   :  { %436 = vmatpush.bf16.msrb.mxu1 %v2224_v1  ;;  %v2112_v3 = vor.u32 %v2320_v61, %v2109_v62  ;;  %v2173_v7 = vld [vmem:[%s3285_s3 + $0x108] sm:$0xf0]  ;;  %s2534_s12 = smov 24   ;;  %s2536_s15 = smov 16  }
  0x2c   :  { %418 = vmatpush.bf16.msrb.mxu0 %v2152_v0  ;;  %s2538_s16 = smov 72   ;;  %s2029_s26 = sshll.u32 %s3289_s7, 4  ;;  %s2030_s26 = int_to_ptr.hbm [resolvable:$true] %s2029_s26 }
  0x2d   :  { %s2540_s27 = smov 128  }
  0x2e   :  { %400 = vmatpush.bf16.msra.mxu3 %v2080_v13 }
  0x2f   :  { %437 = vmatpush.bf16.msrb.mxu1 %v2216_v22 }
  0x30   :  { %419 = vmatpush.bf16.msrb.mxu0 %v2144_v18 }
  0x33   :  { %353 = vmatmul.bf16.gmra.mxu0 %v2770_v23 }
  0x34   :  { %372 = vmatmul.bf16.gmra.mxu1 %v2774_v25 }
  0x35   :  { %391 = vmatmul.bf16.gmra.mxu2 %v2772_v24 }
  0xa0   :  { %v349_v28 = vpop.f32.mrf.mxu0 }
  0xa1   :  { %v368_v29 = vpop.f32.mrf.mxu1  ;;  %v350_v30 = vadd.f32 %v349_v28, %v2785_v27 }
  0xa3   :  { %v369_v32 = vadd.f32 %v368_v29, %v350_v30  ;;  %v2133_v29 = vld [vmem:[%s3285_s3 + $0xb8] sm:$0xf0]  ;;  %v2344_v30 = vld [vmem:[%s3285_s3 + $0x144] sm:$0xf] }
  0xa4   :  { %v2136_v36 = vor.u32 %v2326_v21, %v2133_v29 }
  0xa6   :  { %420 = vmatpush.bf16.msrb.mxu0 %v2136_v36 }
  0xa8   :  { %v387_v31 = vpop.f32.mrf.mxu2  ;;  %v351_v33 = vpop.f32.mrf.mxu0 }
  0xa9   :  { %v370_v34 = vpop.f32.mrf.mxu1  ;;  %v352_v38 = vadd.f32 %v351_v33, %v2785_v27  ;;  %v388_v46 = vadd.f32 %v387_v31, %v369_v32  ;;  %v2205_v31 = vld [vmem:[%s3285_s3 + $0x148] sm:$0xf0] }
  0xaa   :  { %v2208_v40 = vor.u32 %v2344_v30, %v2205_v31 }
  0xab   :  { %v371_v52 = vadd.f32 %v370_v34, %v352_v38  ;;  %v454_v58 = vpack.c.bf16 %v388_v46, %v388_v46  ;;  %v2072_v34 = vor.u32 %v2310_v19, %v2069_v20  ;;  %v2061_v38 = vld [vmem:[%s3285_s3 + $0x28] sm:$0xf0] }
  0xac   :  { %v2064_v45 = vor.u32 %v2308_v37, %v2061_v38  ;;  %438 = vmatpush.bf16.msrb.mxu1 %v2208_v40 }
  0xad   :  { %v464_v10 = vunpack.c.l.b16 %v454_v58  ;;  %401 = vmatpush.bf16.msra.mxu3 %v2072_v34 }
  0xb0   :  { %v389_v56 = vpop.f32.mrf.mxu2  ;;  %v354_v60 = vpop.f32.mrf.mxu0  ;;  %439 = vmatpush.bf16.msrb.mxu1 %v2200_v50 }
  0xb1   :  { %v390_v59 = vadd.f32 %v389_v56, %v371_v52  ;;  %v373_v6 = vpop.f32.mrf.mxu1  ;;  %v355_v12 = vadd.f32 %v354_v60, %v2785_v27  ;;  %v2322_v52 = vld [vmem:[%s3285_s3 + $0x94] sm:$0xf]  ;;  %402 = vmatpush.bf16.msra.mxu3 %v2064_v45  ;;  %v2056_v56 = vor.u32 %v2306_v48, %v2053_v49  ;;  %v2045_v60 = vld [vmem:[%s3285_s3 + $0x8] sm:$0xf0] }
  0xb2   :  { %v2120_v58 = vor.u32 %v2322_v52, %v2117_v53 }
  0xb3   :  { %v455_v2 = vpack.c.bf16 %v390_v59, %v390_v59  ;;  %v374_v32 = vadd.f32 %v373_v6, %v355_v12  ;;  %v2304_v59 = vld [vmem:[%s3285_s3 + $0x4] sm:$0xf]  ;;  %v2192_v6 = vor.u32 %v2340_v4, %v2189_v5 }
  0xb4   :  { %v2048_v1 = vor.u32 %v2304_v59, %v2045_v60 }
  0xb5   :  { %v465_v11 = vunpack.c.l.b16 %v455_v2  ;;  %403 = vmatpush.bf16.msra.mxu3 %v2056_v56  ;;  %440 = vmatpush.bf16.msrb.mxu1 %v2192_v6 }
  0xb7   :  { %v2856_v17 = vpack.c.b16 %v465_v11, %v464_v10 }
  0xb8   :  { %v392_v28 = vpop.f32.mrf.mxu2  ;;  %v356_v33 = vpop.f32.mrf.mxu0 }
  0xb9   :  { %623 = vrot.lane.b32.xlu2 %v2856_v17, %s2524_s30  ;;  %625 = vrot.lane.b32.xlu1 %v2856_v17, %s2525_s8  ;;  %v357_v35 = vadd.f32 %v356_v33, %v2785_v27  ;;  %v2125_v27 = vld [vmem:[%s3285_s3 + $0xa8] sm:$0xf0]  ;;  %v393_v43 = vadd.f32 %v392_v28, %v374_v32  ;;  %v375_v44 = vpop.f32.mrf.mxu1  ;;  %v97_v28 = vperm.slane %v2782_v26, 1 }
  0xba   :  { %467 = vrot.lane.b32.xlu0 %v2856_v17, %s2526_s4  ;;  %v2128_v47 = vor.u32 %v2324_v39, %v2125_v27  ;;  %404 = vmatpush.bf16.msra.mxu3 %v2048_v1 }
  0xbb   :  { %v376_v46 = vadd.f32 %v375_v44, %v357_v35  ;;  %v456_v54 = vpack.c.bf16 %v393_v43, %v393_v43 }
  0xbc   :  { %421 = vmatpush.bf16.msrb.mxu0 %v2128_v47 }
  0xbd   :  { %v492_v63 = vunpack.c.l.b16 %v456_v54  ;;  %405 = vmatmul.bf16.vlgmr.msra.gmra.mxu3 %v2743_v14  ;;  %v2338_v14 = vld [vmem:[%s3285_s3 + $0x114] sm:$0xf] }
  0xc0   :  { %v394_v51 = vpop.f32.mrf.mxu2  ;;  %422 = vmatpush.bf16.msrb.mxu0 %v2120_v58 }
  0xc1   :  { %v395_v55 = vadd.f32 %v394_v51, %v376_v46 }
  0xc3   :  { %v457_v57 = vpack.c.bf16 %v395_v55, %v395_v55 }
  0xc4   :  { %423 = vmatpush.bf16.msrb.mxu0 %v2112_v3 }
  0xc5   :  { %v493_v0 = vunpack.c.l.b16 %v457_v57 }
  0xc7   :  { %v2925_v2 = vpack.c.b16 %v493_v0, %v492_v63  ;;  %424 = vmatmul.bf16.vlgmr.msrb.gmra.mxu0 %v2745_v15  ;;  %v2181_v15 = vld [vmem:[%s3285_s3 + $0x118] sm:$0xf0] }
  0xc9   :  { %649 = vrot.lane.b32.xlu1 %v2925_v2, %s2525_s8  ;;  %495 = vrot.lane.b32.xlu0 %v2925_v2, %s2526_s4  ;;  %s2535_s8 = smov 80   ;;  %s2537_s4 = smov 8  }
  0xca   :  { %647 = vrot.lane.b32.xlu2 %v2925_v2, %s2524_s30 }
  0xcd   :  { %410 = vmatmul.bf16.gmra.mxu3 %v2770_v23  ;;  %v2184_v23 = vor.u32 %v2338_v14, %v2181_v15 }
  0xcf   :  { %441 = vmatpush.bf16.msrb.mxu1 %v2184_v23 }
  0xd7   :  { %429 = vmatmul.bf16.gmra.mxu0 %v2774_v25  ;;  %v2336_v25 = vld [vmem:[%s3285_s3 + $0x104] sm:$0xf]  ;;  %s2527_s3 = smov 48  }
  0xd8   :  { %v2176_v8 = vor.u32 %v2336_v25, %v2173_v7 }
  0xda   :  { %442 = vmatpush.bf16.msrb.mxu1 %v2176_v8 }
  0xdd   :  { %443 = vmatmul.bf16.vlgmr.msrb.gmra.mxu1 %v2747_v16 }
  0xed   :  { %448 = vmatmul.bf16.gmra.mxu1 %v2772_v24 }
 0x113   :  { %v624_v13 = vpop.permute.xlu2 %623 }
 0x124   :  { %v648_v20 = vpop.permute.xlu2 %647 }
 0x12b   :  { %v626_v9 = vpop.permute.xlu1 %625 }
 0x12c   :  { %v631_v10 = vsel %vm469_vm0, %v626_v9, 0  ;;  %v468_v11 = vpop.permute.xlu0 %467 }
 0x12d   :  { %v474_v12 = vsel %vm469_vm0, %v468_v11, 0  ;;  %640 = vmatpush.bf16.xpose.msra.mxu0 %v631_v10 }
 0x12e   :  { %483 = vmatpush.bf16.xpose.msrb.mxu3 %v474_v12 }
 0x134   :  { %2237 = vmatmul.msk.bf16.vlgmr.msra.gmra.mxu0 %vm469_vm0, %v624_v13 }
 0x135   :  { %2233 = vmatmul.msk.bf16.vlgmr.msrb.gmra.mxu3 %vm469_vm0, %v2856_v17 }
 0x13b   :  { %v650_v18 = vpop.permute.xlu1 %649  ;;  %v496_v19 = vpop.permute.xlu0 %495 }
 0x13c   :  { %v655_v16 = vsel %vm469_vm0, %v650_v18, 0  ;;  %v501_v24 = vsel %vm469_vm0, %v496_v19, 0 }
 0x13d   :  { %510 = vmatpush.bf16.xpose.msra.mxu3 %v501_v24  ;;  %664 = vmatpush.bf16.xpose.msra.mxu1 %v655_v16 }
 0x140   :  { %v406_v21 = vpop.f32.mrf.mxu3 }
 0x141   :  { %v407_v29 = vadd.f32 %v406_v21, %v97_v28 }
 0x144   :  { %2238 = vmatmul.msk.bf16.vlgmr.msra.gmra.mxu1 %vm469_vm0, %v648_v20  ;;  %v425_v22 = vpop.f32.mrf.mxu0 }
 0x145   :  { %2234 = vmatmul.msk.bf16.vlgmr.msra.gmra.mxu3 %vm469_vm0, %v2925_v2  ;;  %v426_v31 = vadd.f32 %v425_v22, %v407_v29 }
 0x148   :  { %v408_v30 = vpop.f32.mrf.mxu3 }
 0x149   :  { %v409_v34 = vadd.f32 %v408_v30, %v97_v28 }
 0x14c   :  { %v427_v32 = vpop.f32.mrf.mxu0 }
 0x14d   :  { %v428_v36 = vadd.f32 %v427_v32, %v409_v34 }
 0x150   :  { %v411_v37 = vpop.f32.mrf.mxu3 }
 0x151   :  { %v412_v42 = vadd.f32 %v411_v37, %v97_v28 }
 0x154   :  { %v430_v27 = vpop.f32.mrf.mxu0 }
 0x155   :  { %v431_v26 = vadd.f32 %v430_v27, %v412_v42 }
 0x158   :  { %v413_v46 = vpop.f32.mrf.mxu3 }
 0x159   :  { %v414_v48 = vadd.f32 %v413_v46, %v97_v28 }
 0x15a   :  { %v444_v33 = vpop.f32.mrf.mxu1 }
 0x15b   :  { %v445_v35 = vadd.f32 %v444_v33, %v426_v31 }
 0x15c   :  { %v432_v50 = vpop.f32.mrf.mxu0 }
 0x15d   :  { %v458_v38 = vpack.c.bf16 %v445_v35, %v445_v35  ;;  %v433_v52 = vadd.f32 %v432_v50, %v414_v48 }
 0x15f   :  { %v573_v41 = vunpack.c.l.b16 %v458_v38 }
 0x162   :  { %v446_v39 = vpop.f32.mrf.mxu1 }
 0x163   :  { %v447_v40 = vadd.f32 %v446_v39, %v428_v36 }
 0x165   :  { %v459_v43 = vpack.c.bf16 %v447_v40, %v447_v40 }
 0x167   :  { %v574_v44 = vunpack.c.l.b16 %v459_v43 }
 0x169   :  { %v2968_v45 = vpack.c.b16 %v574_v44, %v573_v41 }
 0x16a   :  { %v449_v47 = vpop.f32.mrf.mxu1 }
 0x16b   :  { %587 = vmatpush.bf16.msrb.mxu2 %v2968_v45  ;;  %v450_v49 = vadd.f32 %v449_v47, %v431_v26 }
 0x16d   :  { %v460_v51 = vpack.c.bf16 %v450_v49, %v450_v49 }
 0x16f   :  { %v601_v55 = vunpack.c.l.b16 %v460_v51 }
 0x172   :  { %v451_v53 = vpop.f32.mrf.mxu1 }
 0x173   :  { %v452_v54 = vadd.f32 %v451_v53, %v433_v52 }
 0x175   :  { %v461_v56 = vpack.c.bf16 %v452_v54, %v452_v54 }
 0x177   :  { %v602_v57 = vunpack.c.l.b16 %v461_v56 }
 0x179   :  { %v2971_v58 = vpack.c.b16 %v602_v57, %v601_v55 }
 0x17b   :  { %615 = vmatpush.bf16.msrb.mxu3 %v2971_v58 }
 0x1b1   :  { %v642_v13 = vpop.f32.mrf.mxu0 }
 0x1b2   :  { %v671_v21 = vsel %vm517_vm1, %v642_v13, -inf }
 0x1b8   :  { %v485_v59 = vpop.f32.mrf.mxu3 }
 0x1b9   :  { %v518_v60 = vsel %vm517_vm1, %v485_v59, -inf  ;;  %v644_v28 = vpop.f32.mrf.mxu0 }
 0x1ba   :  { %519 = vmax.xlane.f32.xlu0 %v518_v60  ;;  %v674_v32 = vsel %vm517_vm1, %v644_v28, -inf }
 0x1c0   :  { %v487_v61 = vpop.f32.mrf.mxu3 }
 0x1c1   :  { %v521_v62 = vsel %vm517_vm1, %v487_v61, -inf  ;;  %v2980_v18 = vpop.f32.mrf.mxu1 }
 0x1c2   :  { %522 = vmax.xlane.f32.xlu1 %v521_v62  ;;  %v677_v34 = vsel %vm517_vm1, %v2980_v18, -inf }
 0x1c8   :  { %v512_v63 = vpop.f32.mrf.mxu3 }
 0x1c9   :  { %v524_v0 = vsel %vm517_vm1, %v512_v63, -inf  ;;  %v668_v29 = vpop.f32.mrf.mxu1 }
 0x1ca   :  { %525 = vmax.xlane.f32.xlu2 %v524_v0  ;;  %v680_v31 = vsel %vm517_vm1, %v668_v29, -inf }
 0x1d0   :  { %v514_v1 = vpop.f32.mrf.mxu3 }
 0x1d1   :  { %v527_v3 = vsel %vm517_vm1, %v514_v1, -inf }
 0x1d2   :  { %528 = vmax.xlane.f32.xlu2 %v527_v3 }
 0x22d   :  { %v520_v4 = vpop.xlane.xlu0 %519 }
 0x22e   :  { %v530_v5 = vsub.f32 %v485_v59, %v520_v4 }
 0x230   :  { %v534_v6 = vmul.f32 1.442695, %v530_v5 }
 0x232   :  { %2370 = vpow2.f32 %v534_v6 }
 0x235   :  { %v523_v14 = vpop.xlane.xlu1 %522 }
 0x236   :  { %v531_v15 = vsub.f32 %v487_v61, %v523_v14 }
 0x238   :  { %v2371_v23 = vpop.eup %2370  ;;  %v536_v25 = vmul.f32 1.442695, %v531_v15 }
 0x239   :  { %v542_v7 = vsel %vm517_vm1, %v2371_v23, 0.0 }
 0x23a   :  { %2372 = vpow2.f32 %v536_v25  ;;  %543 = vadd.xlane.f32.xlu0 %v542_v7 }
 0x23d   :  { %v526_v8 = vpop.xlane.xlu2 %525 }
 0x23e   :  { %v532_v9 = vsub.f32 %v512_v63, %v526_v8 }
 0x240   :  { %v2373_v10 = vpop.eup %2372  ;;  %v538_v11 = vmul.f32 1.442695, %v532_v9 }
 0x241   :  { %v545_v12 = vsel %vm517_vm1, %v2373_v10, 0.0 }
 0x242   :  { %2374 = vpow2.f32 %v538_v11  ;;  %546 = vadd.xlane.f32.xlu1 %v545_v12 }
 0x245   :  { %v529_v19 = vpop.xlane.xlu2 %528 }
 0x246   :  { %v533_v16 = vsub.f32 %v514_v1, %v529_v19 }
 0x248   :  { %v2375_v24 = vpop.eup %2374  ;;  %v540_v20 = vmul.f32 1.442695, %v533_v16 }
 0x249   :  { %v548_v22 = vsel %vm517_vm1, %v2375_v24, 0.0 }
 0x24a   :  { %2376 = vpow2.f32 %v540_v20  ;;  %672 = vmax.xlane.f32.xlu1 %v671_v21  ;;  %549 = vadd.xlane.f32.xlu2 %v548_v22 }
 0x250   :  { %v2377_v30 = vpop.eup %2376 }
 0x251   :  { %v551_v33 = vsel %vm517_vm1, %v2377_v30, 0.0 }
 0x252   :  { %681 = vmax.xlane.f32.xlu1 %v680_v31  ;;  %675 = vmax.xlane.f32.xlu2 %v674_v32 }
 0x253   :  { %552 = vadd.xlane.f32.xlu0 %v551_v33 }
 0x25b   :  { %678 = vmax.xlane.f32.xlu0 %v677_v34 }
 0x2ad   :  { %v544_v35 = vpop.xlane.xlu0 %543 }
 0x2ae   :  { %2378 = vrcp.f32 %v544_v35 }
 0x2b4   :  { %v2379_v37 = vpop.eup %2378 }
 0x2b5   :  { %v547_v36 = vpop.xlane.xlu1 %546  ;;  %v558_v38 = vmul.f32 %v2379_v37, %v2371_v23 }
 0x2b6   :  { %2380 = vrcp.f32 %v547_v36 }
 0x2b7   :  { %v562_v40 = vpack.c.bf16 %v558_v38, %v558_v38 }
 0x2b9   :  { %v568_v46 = vunpack.c.l.b16 %v562_v40 }
 0x2bc   :  { %v2381_v39 = vpop.eup %2380 }
 0x2bd   :  { %v559_v27 = vmul.f32 %v2381_v39, %v2373_v10  ;;  %v673_v41 = vpop.xlane.xlu1 %672  ;;  %v550_v42 = vpop.xlane.xlu2 %549  ;;  %v622_v10 = vld [vmem:[%s3287_s5] sm:$0xff] }
 0x2be   :  { %v683_v43 = vsub.f32 %v642_v13, %v673_v41  ;;  %2382 = vrcp.f32 %v550_v42  ;;  %839 = vmatpush.msrb.mxu1 %v622_v10 }
 0x2bf   :  { %v563_v44 = vpack.c.bf16 %v559_v27, %v559_v27 }
 0x2c0   :  { %v687_v26 = vmul.f32 1.442695, %v683_v43 }
 0x2c1   :  { %v569_v47 = vunpack.c.l.b16 %v563_v44 }
 0x2c2   :  { %2384 = vpow2.f32 %v687_v26 }
 0x2c3   :  { %v570_v48 = vpack.c.b16 %v569_v47, %v568_v46 }
 0x2c4   :  { %v2383_v54 = vpop.eup %2382 }
 0x2c5   :  { %v682_v49 = vpop.xlane.xlu1 %681  ;;  %v676_v50 = vpop.xlane.xlu2 %675  ;;  %2235 = vmatmul.msk.bf16.vlgmr.msrb.gmra.mxu2 %vm517_vm1, %v570_v48  ;;  %v560_v60 = vmul.f32 %v2383_v54, %v2375_v24  ;;  %v2241_v54 = vld [vmem:[%s3287_s5 + $0x8] sm:$0xff] }
 0x2c6   :  { %v686_v51 = vsub.f32 %v668_v29, %v682_v49  ;;  %v684_v52 = vsub.f32 %v644_v28, %v676_v50  ;;  %v553_v53 = vpop.xlane.xlu0 %552  ;;  %798 = vmatpush.msrb.mxu0 %v2241_v54 }
 0x2c7   :  { %2386 = vrcp.f32 %v553_v53  ;;  %v564_v62 = vpack.c.bf16 %v560_v60, %v560_v60 }
 0x2c8   :  { %v2385_v55 = vpop.eup %2384  ;;  %v693_v56 = vmul.f32 1.442695, %v686_v51  ;;  %v689_v57 = vmul.f32 1.442695, %v684_v52 }
 0x2c9   :  { %v695_v59 = vsel %vm517_vm1, %v2385_v55, 0.0  ;;  %v596_v15 = vunpack.c.l.b16 %v564_v62 }
 0x2ca   :  { %2388 = vpow2.f32 %v693_v56  ;;  %696 = vadd.xlane.f32.xlu2 %v695_v59 }
 0x2cb   :  { %2390 = vpow2.f32 %v689_v57 }
 0x2cd   :  { %v2387_v61 = vpop.eup %2386 }
 0x2ce   :  { %v561_v63 = vmul.f32 %v2387_v61, %v2377_v30  ;;  %v679_v0 = vpop.xlane.xlu0 %678 }
 0x2cf   :  { %v685_v1 = vsub.f32 %v2980_v18, %v679_v0 }
 0x2d0   :  { %v2992_v3 = vpop.eup %2388  ;;  %v565_v4 = vpack.c.bf16 %v561_v63, %v561_v63 }
 0x2d1   :  { %v2391_v5 = vpop.eup %2390  ;;  %v691_v6 = vmul.f32 1.442695, %v685_v1  ;;  %v704_v14 = vsel %vm517_vm1, %v2992_v3, 0.0 }
 0x2d2   :  { %v597_v23 = vunpack.c.l.b16 %v565_v4  ;;  %705 = vadd.xlane.f32.xlu2 %v704_v14  ;;  %v698_v25 = vsel %vm517_vm1, %v2391_v5, 0.0 }
 0x2d3   :  { %2392 = vpow2.f32 %v691_v6  ;;  %699 = vadd.xlane.f32.xlu0 %v698_v25 }
 0x2d4   :  { %v598_v7 = vpack.c.b16 %v597_v23, %v596_v15 }
 0x2d6   :  { %2236 = vmatmul.msk.bf16.vlgmr.msrb.gmra.mxu3 %vm517_vm1, %v598_v7 }
 0x2d9   :  { %v2393_v8 = vpop.eup %2392 }
 0x2da   :  { %v701_v9 = vsel %vm517_vm1, %v2393_v8, 0.0 }
 0x2db   :  { %702 = vadd.xlane.f32.xlu1 %v701_v9 }
 0x2e7   :  { %724 = vrot.lane.b32.xlu0 %v2968_v45, %s2524_s30 }
 0x2ea   :  { %855 = vrot.lane.b32.xlu2 %v2856_v17, %s2527_s3 }
 0x2ef   :  { %879 = vrot.lane.b32.xlu0 %v2925_v2, %s2527_s3 }
 0x2f2   :  { %1048 = vrot.lane.b32.xlu2 %v2856_v17, %s2528_s23 }
 0x2f4   :  { %749 = vrot.lane.b32.xlu1 %v2971_v58, %s2524_s30 }
 0x2f7   :  { %877 = vrot.lane.b32.xlu0 %v2925_v2, %s2529_s24 }
 0x2fc   :  { %853 = vrot.lane.b32.xlu1 %v2856_v17, %s2529_s24 }
 0x304   :  { %1046 = vrot.lane.b32.xlu1 %v2856_v17, %s2530_s25 }
 0x33d   :  { %v697_v11 = vpop.xlane.xlu2 %696 }
 0x345   :  { %v706_v12 = vpop.xlane.xlu2 %705 }
 0x346   :  { %v700_v13 = vpop.xlane.xlu0 %699 }
 0x347   :  { %2394 = vrcp.f32 %v700_v13 }
 0x348   :  { %2396 = vrcp.f32 %v697_v11  ;;  %v589_v18 = vpop.f32.mrf.mxu2 }
 0x349   :  { %2246 = vmatmul.msk.f32.vlgmr.msrb.gmra.mxu1 %vm469_vm0, %v589_v18 }
 0x34d   :  { %v2395_v19 = vpop.eup %2394  ;;  %v856_v16 = vpop.permute.xlu2 %855 }
 0x34e   :  { %v2397_v24 = vpop.eup %2396  ;;  %v712_v20 = vmul.f32 %v2395_v19, %v2391_v5  ;;  %v703_v21 = vpop.xlane.xlu1 %702  ;;  %v861_v38 = vsel %vm469_vm0, %v856_v16, 0 }
 0x34f   :  { %v711_v28 = vmul.f32 %v2397_v24, %v2385_v55  ;;  %2398 = vrcp.f32 %v703_v21 }
 0x350   :  { %v591_v22 = vpop.f32.mrf.mxu2  ;;  %v716_v29 = vpack.c.bf16 %v712_v20, %v712_v20  ;;  %2400 = vrcp.f32 %v706_v12 }
 0x351   :  { %2247 = vmatmul.msk.f32.gmra.mxu1 %vm469_vm0, %v591_v22  ;;  %v715_v30 = vpack.c.bf16 %v711_v28, %v711_v28 }
 0x352   :  { %v722_v33 = vunpack.c.l.b16 %v716_v29 }
 0x353   :  { %v721_v35 = vunpack.c.l.b16 %v715_v30 }
 0x355   :  { %v1049_v31 = vpop.permute.xlu2 %1048  ;;  %v2399_v34 = vpop.eup %2398  ;;  %v723_v40 = vpack.c.b16 %v722_v33, %v721_v35 }
 0x356   :  { %v1054_v32 = vsel %vm469_vm0, %v1049_v31, 0  ;;  %v2401_v39 = vpop.eup %2400  ;;  %v713_v27 = vmul.f32 %v2399_v34, %v2393_v8 }
 0x357   :  { %1063 = vmatpush.bf16.xpose.msra.mxu1 %v1054_v32  ;;  %v714_v41 = vmul.f32 %v2401_v39, %v2992_v3 }
 0x358   :  { %v717_v42 = vpack.c.bf16 %v713_v27, %v713_v27 }
 0x359   :  { %v617_v36 = vpop.f32.mrf.mxu3  ;;  %v725_v37 = vpop.permute.xlu0 %724  ;;  %v718_v44 = vpack.c.bf16 %v714_v41, %v714_v41 }
 0x35a   :  { %737 = vmatpush.bf16.msra.mxu2 %v725_v37  ;;  %2248 = vmatmul.msk.f32.gmra.mxu1 %vm469_vm0, %v617_v36  ;;  %v746_v26 = vunpack.c.l.b16 %v717_v42 }
 0x35b   :  { %v747_v47 = vunpack.c.l.b16 %v718_v44 }
 0x35d   :  { %2239 = vmatmul.msk.bf16.vlgmr.msra.gmra.mxu2 %vm517_vm1, %v723_v40  ;;  %v748_v50 = vpack.c.b16 %v747_v47, %v746_v26 }
 0x35e   :  { %870 = vmatpush.bf16.xpose.msrb.mxu2 %v861_v38 }
 0x361   :  { %v619_v43 = vpop.f32.mrf.mxu3  ;;  %v880_v46 = vpop.permute.xlu0 %879 }
 0x362   :  { %2249 = vmatmul.msk.f32.gmra.mxu1 %vm469_vm0, %v619_v43  ;;  %v885_v49 = vsel %vm469_vm0, %v880_v46, 0 }
 0x366   :  { %v750_v48 = vpop.permute.xlu1 %749 }
 0x367   :  { %762 = vmatpush.bf16.msra.mxu3 %v750_v48 }
 0x369   :  { %v878_v53 = vpop.permute.xlu0 %877 }
 0x36a   :  { %2240 = vmatmul.msk.bf16.vlgmr.msra.gmra.mxu3 %vm517_vm1, %v748_v50 }
 0x36b   :  { %894 = vmatpush.bf16.xpose.msrb.mxu3 %v885_v49 }
 0x36e   :  { %v854_v51 = vpop.permute.xlu1 %853 }
 0x36f   :  { %2250 = vmatmul.msk.bf16.vlgmr.msrb.gmra.mxu2 %vm469_vm0, %v854_v51 }
 0x376   :  { %v1047_v52 = vpop.permute.xlu1 %1046 }
 0x377   :  { %2259 = vmatmul.msk.bf16.vlgmr.msra.gmra.mxu1 %vm469_vm0, %v1047_v52 }
 0x37a   :  { %2251 = vmatmul.msk.bf16.vlgmr.msrb.gmra.mxu3 %vm469_vm0, %v878_v53 }
 0x3c6   :  { %v3032_v55 = vpop.f32.mrf.mxu1 }
 0x3ce   :  { %v3034_v56 = vpop.f32.mrf.mxu1 }
 0x3d7   :  { %v3037_v59 = vpop.f32.mrf.mxu1 }
 0x3df   :  { %v3040_v62 = vpop.f32.mrf.mxu1 }
 0x3e0   :  { %v739_v57 = vpop.f32.mrf.mxu2 }
 0x3e1   :  { %2242 = vmatmul.msk.f32.vlgmr.msrb.gmra.mxu0 %vm469_vm0, %v739_v57 }
 0x3e8   :  { %v741_v60 = vpop.f32.mrf.mxu2 }
 0x3e9   :  { %2243 = vmatmul.msk.f32.gmra.mxu0 %vm469_vm0, %v741_v60 }
 0x3ed   :  { %v764_v61 = vpop.f32.mrf.mxu3 }
 0x3f1   :  { %2244 = vmatmul.msk.f32.gmra.mxu0 %vm469_vm0, %v764_v61 }
 0x3f2   :  { %v872_v63 = vpop.f32.mrf.mxu2 }
 0x3f3   :  { %v901_v0 = vsel %vm517_vm1, %v872_v63, -inf }
 0x3f4   :  { %902 = vmax.xlane.f32.xlu0 %v901_v0  ;;  %v1065_v3 = vpop.f32.mrf.mxu1 }
 0x3f5   :  { %v766_v1 = vpop.f32.mrf.mxu3  ;;  %v1094_v23 = vsel %vm517_vm1, %v1065_v3, -inf }
 0x3f9   :  { %2245 = vmatmul.msk.f32.gmra.mxu0 %vm469_vm0, %v766_v1 }
 0x3fa   :  { %v874_v4 = vpop.f32.mrf.mxu2 }
 0x3fb   :  { %v904_v5 = vsel %vm517_vm1, %v874_v4, -inf }
 0x3fc   :  { %905 = vmax.xlane.f32.xlu2 %v904_v5  ;;  %v1067_v15 = vpop.f32.mrf.mxu1 }
 0x3fd   :  { %v896_v6 = vpop.f32.mrf.mxu3  ;;  %v1097_v7 = vsel %vm517_vm1, %v1067_v15, -inf }
 0x3fe   :  { %v907_v14 = vsel %vm517_vm1, %v896_v6, -inf }
 0x3ff   :  { %908 = vmax.xlane.f32.xlu1 %v907_v14 }
 0x404   :  { %1095 = vmax.xlane.f32.xlu2 %v1094_v23 }
 0x405   :  { %v898_v25 = vpop.f32.mrf.mxu3 }
 0x406   :  { %v910_v8 = vsel %vm517_vm1, %v898_v25, -inf }
 0x407   :  { %1098 = vmax.xlane.f32.xlu1 %v1097_v7  ;;  %911 = vmax.xlane.f32.xlu0 %v910_v8 }
 0x41c   :  { %954 = vrot.lane.b32.xlu2 %v2968_v45, %s2529_s24 }
 0x420   :  { %979 = vrot.lane.b32.xlu1 %v2971_v58, %s2529_s24 }
 0x467   :  { %v903_v9 = vpop.xlane.xlu0 %902 }
 0x468   :  { %v913_v10 = vsub.f32 %v872_v63, %v903_v9 }
 0x46a   :  { %v917_v11 = vmul.f32 1.442695, %v913_v10 }
 0x46c   :  { %2402 = vpow2.f32 %v917_v11 }
 0x46f   :  { %v906_v12 = vpop.xlane.xlu2 %905 }
 0x470   :  { %v914_v13 = vsub.f32 %v874_v4, %v906_v12 }
 0x472   :  { %v2403_v18 = vpop.eup %2402  ;;  %v919_v19 = vmul.f32 1.442695, %v914_v13  ;;  %v909_v16 = vpop.xlane.xlu1 %908 }
 0x473   :  { %v915_v24 = vsub.f32 %v896_v6, %v909_v16  ;;  %v925_v20 = vsel %vm517_vm1, %v2403_v18, 0.0 }
 0x474   :  { %2404 = vpow2.f32 %v919_v19  ;;  %926 = vadd.xlane.f32.xlu0 %v925_v20 }
 0x475   :  { %v921_v21 = vmul.f32 1.442695, %v915_v24 }
 0x477   :  { %2406 = vpow2.f32 %v921_v21  ;;  %v1096_v22 = vpop.xlane.xlu2 %1095 }
 0x478   :  { %v1106_v34 = vsub.f32 %v1065_v3, %v1096_v22 }
 0x47a   :  { %v2405_v28 = vpop.eup %2404  ;;  %v912_v29 = vpop.xlane.xlu0 %911  ;;  %v1110_v37 = vmul.f32 1.442695, %v1106_v34 }
 0x47b   :  { %v916_v30 = vsub.f32 %v898_v25, %v912_v29  ;;  %v928_v31 = vsel %vm517_vm1, %v2405_v28, 0.0  ;;  %v1099_v38 = vpop.xlane.xlu1 %1098 }
 0x47c   :  { %929 = vadd.xlane.f32.xlu2 %v928_v31  ;;  %v1107_v40 = vsub.f32 %v1067_v15, %v1099_v38 }
 0x47d   :  { %v2407_v32 = vpop.eup %2406  ;;  %v923_v33 = vmul.f32 1.442695, %v916_v30 }
 0x47e   :  { %v931_v35 = vsel %vm517_vm1, %v2407_v32, 0.0  ;;  %v1112_v41 = vmul.f32 1.442695, %v1107_v40 }
 0x47f   :  { %v955_v36 = vpop.permute.xlu2 %954  ;;  %932 = vadd.xlane.f32.xlu1 %v931_v35  ;;  %2408 = vpow2.f32 %v923_v33  ;;  %v2263_v33 = vld [vmem:[%s3287_s5 + $0x18] sm:$0xff] }
 0x480   :  { %967 = vmatpush.bf16.msra.mxu2 %v955_v36  ;;  %2410 = vpow2.f32 %v1110_v37 }
 0x481   :  { %2412 = vpow2.f32 %v1112_v41 }
 0x485   :  { %v2409_v39 = vpop.eup %2408 }
 0x486   :  { %v934_v27 = vsel %vm517_vm1, %v2409_v39, 0.0  ;;  %v2411_v42 = vpop.eup %2410 }
 0x487   :  { %935 = vadd.xlane.f32.xlu0 %v934_v27  ;;  %v1118_v43 = vsel %vm517_vm1, %v2411_v42, 0.0  ;;  %v2413_v26 = vpop.eup %2412 }
 0x488   :  { %v1121_v46 = vsel %vm517_vm1, %v2413_v26, 0.0 }
 0x48f   :  { %1119 = vadd.xlane.f32.xlu0 %v1118_v43 }
 0x492   :  { %v980_v44 = vpop.permute.xlu1 %979 }
 0x493   :  { %992 = vmatpush.bf16.msra.mxu3 %v980_v44 }
 0x494   :  { %1147 = vrot.lane.b32.xlu2 %v2968_v45, %s2530_s25 }
 0x497   :  { %1122 = vadd.xlane.f32.xlu0 %v1121_v46 }
 0x498   :  { %1070 = vrot.lane.b32.xlu1 %v2925_v2, %s2530_s25 }
 0x49c   :  { %1241 = vrot.lane.b32.xlu2 %v2856_v17, %s2531_s0 }
 0x4a0   :  { %1239 = vrot.lane.b32.xlu1 %v2856_v17, %s2532_s2 }
 0x4ab   :  { %1072 = vrot.lane.b32.xlu0 %v2925_v2, %s2528_s23 }
 0x4e7   :  { %v927_v47 = vpop.xlane.xlu0 %926 }
 0x4e8   :  { %2414 = vrcp.f32 %v927_v47  ;;  %v800_v47 = vpop.f32.mrf.mxu0 }
 0x4ee   :  { %v2415_v49 = vpop.eup %2414 }
 0x4ef   :  { %v930_v48 = vpop.xlane.xlu2 %929  ;;  %v941_v50 = vmul.f32 %v2415_v49, %v2403_v18 }
 0x4f0   :  { %2416 = vrcp.f32 %v930_v48  ;;  %v803_v48 = vpop.f32.mrf.mxu0 }
 0x4f1   :  { %v945_v53 = vpack.c.bf16 %v941_v50, %v941_v50 }
 0x4f2   :  { %v933_v51 = vpop.xlane.xlu1 %932 }
 0x4f3   :  { %2418 = vrcp.f32 %v933_v51  ;;  %v951_v61 = vunpack.c.l.b16 %v945_v53  ;;  %v842_v51 = vadd.f32 %v3032_v55, %v800_v47 }
 0x4f6   :  { %v2417_v52 = vpop.eup %2416 }
 0x4f7   :  { %v942_v54 = vmul.f32 %v2417_v52, %v2405_v28  ;;  %v1148_v57 = vpop.permute.xlu2 %1147 }
 0x4f8   :  { %1160 = vmatpush.bf16.msrb.mxu3 %v1148_v57  ;;  %v806_v49 = vpop.f32.mrf.mxu0 }
 0x4f9   :  { %v946_v60 = vpack.c.bf16 %v942_v54, %v942_v54  ;;  %v2419_v1 = vpop.eup %2418  ;;  %v845_v54 = vadd.f32 %v3034_v56, %v803_v48 }
 0x4fa   :  { %v936_v0 = vpop.xlane.xlu0 %935  ;;  %v943_v4 = vmul.f32 %v2419_v1, %v2407_v32  ;;  %v2254_v32 = vld [vmem:[%s3287_s5 + $0x10] sm:$0xff] }
 0x4fb   :  { %v952_v63 = vunpack.c.l.b16 %v946_v60  ;;  %2420 = vrcp.f32 %v936_v0  ;;  %1028 = vmatpush.msra.mxu0 %v2254_v32 }
 0x4fc   :  { %v947_v6 = vpack.c.bf16 %v943_v4, %v943_v4 }
 0x4fd   :  { %v953_v3 = vpack.c.b16 %v952_v63, %v951_v61  ;;  %v848_v61 = vadd.f32 %v3037_v59, %v806_v49 }
 0x4fe   :  { %v976_v25 = vunpack.c.l.b16 %v947_v6 }
 0x4ff   :  { %2252 = vmatmul.msk.bf16.vlgmr.msra.gmra.mxu2 %vm517_vm1, %v953_v3  ;;  %v1242_v8 = vpop.permute.xlu2 %1241 }
 0x500   :  { %v1247_v10 = vsel %vm469_vm0, %v1242_v8, 0  ;;  %v3099_v50 = vpop.f32.mrf.mxu0 }
 0x501   :  { %v2421_v5 = vpop.eup %2420 }
 0x502   :  { %v944_v14 = vmul.f32 %v2421_v5, %v2409_v39  ;;  %v1120_v15 = vpop.xlane.xlu0 %1119 }
 0x503   :  { %2422 = vrcp.f32 %v1120_v15 }
 0x504   :  { %v948_v23 = vpack.c.bf16 %v944_v14, %v944_v14 }
 0x506   :  { %v977_v7 = vunpack.c.l.b16 %v948_v23 }
 0x508   :  { %v978_v9 = vpack.c.b16 %v977_v7, %v976_v25 }
 0x509   :  { %v2423_v12 = vpop.eup %2422 }
 0x50a   :  { %2253 = vmatmul.msk.bf16.vlgmr.msra.gmra.mxu3 %vm517_vm1, %v978_v9  ;;  %v1123_v11 = vpop.xlane.xlu0 %1122  ;;  %v1134_v13 = vmul.f32 %v2423_v12, %v2411_v42  ;;  %v1071_v30 = vpop.permute.xlu1 %1070 }
 0x50b   :  { %1256 = vmatpush.bf16.xpose.msra.mxu3 %v1247_v10  ;;  %2424 = vrcp.f32 %v1123_v11 }
 0x50c   :  { %v1138_v19 = vpack.c.bf16 %v1134_v13, %v1134_v13 }
 0x50e   :  { %v1144_v20 = vunpack.c.l.b16 %v1138_v19 }
 0x511   :  { %v2425_v18 = vpop.eup %2424 }
 0x512   :  { %v1135_v16 = vmul.f32 %v2425_v18, %v2413_v26  ;;  %v1240_v31 = vpop.permute.xlu1 %1239 }
 0x514   :  { %v1139_v24 = vpack.c.bf16 %v1135_v16, %v1135_v16 }
 0x516   :  { %v1145_v21 = vunpack.c.l.b16 %v1139_v24 }
 0x518   :  { %v1146_v22 = vpack.c.b16 %v1145_v21, %v1144_v20 }
 0x51a   :  { %2261 = vmatmul.msk.bf16.vlgmr.msrb.gmra.mxu3 %vm517_vm1, %v1146_v22 }
 0x51d   :  { %v1073_v28 = vpop.permute.xlu0 %1072 }
 0x51e   :  { %v1078_v29 = vsel %vm469_vm0, %v1073_v28, 0 }
 0x51f   :  { %1087 = vmatpush.bf16.xpose.msrb.mxu2 %v1078_v29 }
 0x526   :  { %2260 = vmatmul.msk.bf16.vlgmr.msrb.gmra.mxu2 %vm469_vm0, %v1071_v30 }
 0x527   :  { %1221 = vmatpush.msra.mxu2 %v2263_v33 }
 0x52a   :  { %2268 = vmatmul.msk.bf16.vlgmr.msra.gmra.mxu3 %vm469_vm0, %v1240_v31 }
 0x582   :  { %v969_v34 = vpop.f32.mrf.mxu2 }
 0x583   :  { %2255 = vmatmul.msk.f32.vlgmr.msra.gmra.mxu0 %vm469_vm0, %v969_v34 }
 0x58a   :  { %v971_v35 = vpop.f32.mrf.mxu2 }
 0x58b   :  { %2256 = vmatmul.msk.f32.gmra.mxu0 %vm469_vm0, %v971_v35 }
 0x58d   :  { %v994_v36 = vpop.f32.mrf.mxu3 }
 0x593   :  { %2257 = vmatmul.msk.f32.gmra.mxu0 %vm469_vm0, %v994_v36 }
 0x595   :  { %v996_v37 = vpop.f32.mrf.mxu3 }
 0x59b   :  { %2258 = vmatmul.msk.f32.gmra.mxu0 %vm469_vm0, %v996_v37 }
 0x59d   :  { %v1162_v38 = vpop.f32.mrf.mxu3 }
 0x59e   :  { %2264 = vmatmul.msk.f32.vlgmr.msra.gmra.mxu2 %vm469_vm0, %v1162_v38 }
 0x5a5   :  { %v1164_v39 = vpop.f32.mrf.mxu3 }
 0x5a6   :  { %2265 = vmatmul.msk.f32.gmra.mxu2 %vm469_vm0, %v1164_v39 }
 0x5a9   :  { %v1089_v40 = vpop.f32.mrf.mxu2 }
 0x5aa   :  { %v1100_v27 = vsel %vm517_vm1, %v1089_v40, -inf }
 0x5ab   :  { %1101 = vmax.xlane.f32.xlu2 %v1100_v27 }
 0x5ad   :  { %v1258_v41 = vpop.f32.mrf.mxu3 }
 0x5ae   :  { %v1287_v42 = vsel %vm517_vm1, %v1258_v41, -inf }
 0x5af   :  { %1288 = vmax.xlane.f32.xlu1 %v1287_v42 }
 0x5b1   :  { %v1091_v43 = vpop.f32.mrf.mxu2 }
 0x5b2   :  { %v1103_v44 = vsel %vm517_vm1, %v1091_v43, -inf }
 0x5b3   :  { %1104 = vmax.xlane.f32.xlu0 %v1103_v44 }
 0x5b5   :  { %v1260_v26 = vpop.f32.mrf.mxu3 }
 0x5b6   :  { %v1290_v46 = vsel %vm517_vm1, %v1260_v26, -inf }
 0x5b7   :  { %1291 = vmax.xlane.f32.xlu2 %v1290_v46 }
 0x5cf   :  { %1172 = vrot.lane.b32.xlu2 %v2971_v58, %s2530_s25 }
 0x5d7   :  { %1263 = vrot.lane.b32.xlu2 %v2925_v2, %s2532_s2 }
 0x5df   :  { %1432 = vrot.lane.b32.xlu2 %v2856_v17, %s2533_s11 }
 0x600   :  { %v1030_v52 = vpop.f32.mrf.mxu0 }
 0x601   :  { %v1042_v53 = vadd.f32 %v1030_v52, %v842_v51 }
 0x608   :  { %v1033_v57 = vpop.f32.mrf.mxu0 }
 0x609   :  { %v3103_v60 = vadd.f32 %v1033_v57, %v845_v54 }
 0x610   :  { %v1036_v63 = vpop.f32.mrf.mxu0 }
 0x611   :  { %v3106_v0 = vadd.f32 %v1036_v63, %v848_v61 }
 0x618   :  { %v3129_v61 = vpop.f32.mrf.mxu0 }
 0x61e   :  { %v1102_v1 = vpop.xlane.xlu2 %1101 }
 0x61f   :  { %v1108_v3 = vsub.f32 %v1089_v40, %v1102_v1 }
 0x621   :  { %v1114_v4 = vmul.f32 1.442695, %v1108_v3  ;;  %v1223_v5 = vpop.f32.mrf.mxu2 }
 0x622   :  { %v3108_v6 = vadd.f32 %v1223_v5, %v1042_v53  ;;  %v1289_v13 = vpop.xlane.xlu1 %1288 }
 0x623   :  { %2426 = vpow2.f32 %v1114_v4  ;;  %v1299_v18 = vsub.f32 %v1258_v41, %v1289_v13 }
 0x625   :  { %v1303_v19 = vmul.f32 1.442695, %v1299_v18 }
 0x626   :  { %v1105_v55 = vpop.xlane.xlu0 %1104 }
 0x627   :  { %v1109_v14 = vsub.f32 %v1091_v43, %v1105_v55 }
 0x629   :  { %v2427_v15 = vpop.eup %2426  ;;  %v1116_v23 = vmul.f32 1.442695, %v1109_v14 }
 0x62a   :  { %v1292_v56 = vpop.xlane.xlu2 %1291  ;;  %v1124_v25 = vsel %vm517_vm1, %v2427_v15, 0.0 }
 0x62b   :  { %2428 = vpow2.f32 %v1116_v23  ;;  %v1300_v7 = vsub.f32 %v1260_v26, %v1292_v56  ;;  %1125 = vadd.xlane.f32.xlu0 %v1124_v25 }
 0x62d   :  { %v1305_v59 = vmul.f32 1.442695, %v1300_v7 }
 0x62f   :  { %2430 = vpow2.f32 %v1305_v59 }
 0x630   :  { %2432 = vpow2.f32 %v1303_v19 }
 0x631   :  { %v2429_v8 = vpop.eup %2428 }
 0x632   :  { %v1173_v9 = vpop.permute.xlu2 %1172  ;;  %v1127_v10 = vsel %vm517_vm1, %v2429_v8, 0.0 }
 0x633   :  { %1185 = vmatpush.bf16.msrb.mxu1 %v1173_v9  ;;  %1128 = vadd.xlane.f32.xlu1 %v1127_v10 }
 0x635   :  { %v2431_v11 = vpop.eup %2430 }
 0x636   :  { %v1314_v12 = vsel %vm517_vm1, %v2431_v11, 0.0  ;;  %v2433_v16 = vpop.eup %2432 }
 0x637   :  { %v1311_v24 = vsel %vm517_vm1, %v2433_v16, 0.0 }
 0x63a   :  { %v1264_v38 = vpop.permute.xlu2 %1263 }
 0x63b   :  { %1315 = vadd.xlane.f32.xlu1 %v1314_v12 }
 0x63f   :  { %1265 = vrot.lane.b32.xlu0 %v2925_v2, %s2531_s0 }
 0x642   :  { %v1433_v57 = vpop.permute.xlu2 %1432 }
 0x654   :  { %1340 = vrot.lane.b32.xlu1 %v2968_v45, %s2532_s2 }
 0x65c   :  { %1458 = vrot.lane.b32.xlu1 %v2925_v2, %s2534_s12 }
 0x669   :  { %1312 = vadd.xlane.f32.xlu0 %v1311_v24 }
 0x67d   :  { %1434 = vrot.lane.b32.xlu0 %v2856_v17, %s2534_s12 }
 0x685   :  { %1456 = vrot.lane.b32.xlu0 %v2925_v2, %s2533_s11 }
 0x69e   :  { %v1126_v20 = vpop.xlane.xlu0 %1125 }
 0x69f   :  { %2434 = vrcp.f32 %v1126_v20 }
 0x6a5   :  { %v2435_v22 = vpop.eup %2434 }
 0x6a6   :  { %v1129_v21 = vpop.xlane.xlu1 %1128  ;;  %v1136_v28 = vmul.f32 %v2435_v22, %v2427_v15  ;;  %v2272_v15 = vld [vmem:[%s3287_s5 + $0x20] sm:$0xff] }
 0x6a7   :  { %2436 = vrcp.f32 %v1129_v21 }
 0x6a8   :  { %v1140_v30 = vpack.c.bf16 %v1136_v28, %v1136_v28 }
 0x6aa   :  { %v1169_v34 = vunpack.c.l.b16 %v1140_v30 }
 0x6ad   :  { %v2437_v29 = vpop.eup %2436 }
 0x6ae   :  { %v1137_v31 = vmul.f32 %v2437_v29, %v2429_v8  ;;  %v1316_v39 = vpop.xlane.xlu1 %1315 }
 0x6af   :  { %2438 = vrcp.f32 %v1316_v39 }
 0x6b0   :  { %v1141_v32 = vpack.c.bf16 %v1137_v31, %v1137_v31 }
 0x6b1   :  { %v1266_v33 = vpop.permute.xlu0 %1265 }
 0x6b2   :  { %v1170_v35 = vunpack.c.l.b16 %v1141_v32  ;;  %v1271_v36 = vsel %vm469_vm0, %v1266_v33, 0 }
 0x6b3   :  { %1280 = vmatpush.bf16.xpose.msrb.mxu0 %v1271_v36 }
 0x6b4   :  { %v1171_v37 = vpack.c.b16 %v1170_v35, %v1169_v34 }
 0x6b5   :  { %v2439_v43 = vpop.eup %2438 }
 0x6b6   :  { %2262 = vmatmul.msk.bf16.vlgmr.msrb.gmra.mxu1 %vm517_vm1, %v1171_v37  ;;  %v1328_v44 = vmul.f32 %v2439_v43, %v2431_v11  ;;  %v3147_v11 = vpop.f32.mrf.mxu2 }
 0x6b8   :  { %v1332_v46 = vpack.c.bf16 %v1328_v44, %v1328_v44 }
 0x6ba   :  { %2269 = vmatmul.msk.bf16.vlgmr.msrb.gmra.mxu0 %vm469_vm0, %v1264_v38  ;;  %v1338_v49 = vunpack.c.l.b16 %v1332_v46 }
 0x6bb   :  { %1414 = vmatpush.msra.mxu0 %v2272_v15 }
 0x6c6   :  { %v1341_v40 = vpop.permute.xlu1 %1340 }
 0x6c7   :  { %1353 = vmatpush.bf16.msra.mxu1 %v1341_v40 }
 0x6ce   :  { %v1459_v27 = vpop.permute.xlu1 %1458 }
 0x6cf   :  { %v1464_v41 = vsel %vm469_vm0, %v1459_v27, 0 }
 0x6d0   :  { %1473 = vmatpush.bf16.xpose.msrb.mxu2 %v1464_v41 }
 0x6dc   :  { %v1313_v42 = vpop.xlane.xlu0 %1312 }
 0x6dd   :  { %2440 = vrcp.f32 %v1313_v42 }
 0x6e3   :  { %v2441_v26 = vpop.eup %2440 }
 0x6e4   :  { %v1327_v47 = vmul.f32 %v2441_v26, %v2433_v16 }
 0x6e6   :  { %v1331_v48 = vpack.c.bf16 %v1327_v47, %v1327_v47 }
 0x6e8   :  { %v1337_v51 = vunpack.c.l.b16 %v1331_v48 }
 0x6ea   :  { %v1339_v52 = vpack.c.b16 %v1338_v49, %v1337_v51 }
 0x6ec   :  { %2270 = vmatmul.msk.bf16.vlgmr.msra.gmra.mxu1 %vm517_vm1, %v1339_v52 }
 0x6ef   :  { %v1435_v53 = vpop.permute.xlu0 %1434 }
 0x6f0   :  { %v1440_v54 = vsel %vm469_vm0, %v1435_v53, 0 }
 0x6f1   :  { %1449 = vmatpush.bf16.xpose.msrb.mxu1 %v1440_v54 }
 0x6f7   :  { %v1457_v14 = vpop.permute.xlu0 %1456 }
 0x6fc   :  { %2277 = vmatmul.msk.bf16.vlgmr.msrb.gmra.mxu1 %vm469_vm0, %v1433_v57 }
 0x733   :  { %v1187_v63 = vpop.f32.mrf.mxu1 }
 0x734   :  { %2266 = vmatmul.msk.f32.gmra.mxu2 %vm469_vm0, %v1187_v63 }
 0x737   :  { %v1282_v1 = vpop.f32.mrf.mxu0 }
 0x738   :  { %v1293_v3 = vsel %vm517_vm1, %v1282_v1, -inf }
 0x739   :  { %1294 = vmax.xlane.f32.xlu2 %v1293_v3 }
 0x73b   :  { %v1189_v4 = vpop.f32.mrf.mxu1 }
 0x73c   :  { %2267 = vmatmul.msk.f32.gmra.mxu2 %vm469_vm0, %v1189_v4 }
 0x73f   :  { %v1284_v5 = vpop.f32.mrf.mxu0 }
 0x740   :  { %v1296_v55 = vsel %vm517_vm1, %v1284_v5, -inf }
 0x741   :  { %1297 = vmax.xlane.f32.xlu1 %v1296_v55 }
 0x744   :  { %2278 = vmatmul.msk.bf16.vlgmr.msrb.gmra.mxu2 %vm469_vm0, %v1457_v14 }
 0x769   :  { %v1355_v23 = vpop.f32.mrf.mxu1 }
 0x76a   :  { %2273 = vmatmul.msk.f32.vlgmr.msra.gmra.mxu0 %vm469_vm0, %v1355_v23 }
 0x771   :  { %v1357_v56 = vpop.f32.mrf.mxu1 }
 0x772   :  { %2274 = vmatmul.msk.f32.gmra.mxu0 %vm469_vm0, %v1357_v56 }
 0x779   :  { %v1451_v25 = vpop.f32.mrf.mxu1 }
 0x77a   :  { %v1480_v7 = vsel %vm517_vm1, %v1451_v25, -inf }
 0x77b   :  { %1481 = vmax.xlane.f32.xlu0 %v1480_v7 }
 0x781   :  { %v1453_v59 = vpop.f32.mrf.mxu1 }
 0x782   :  { %v1483_v8 = vsel %vm517_vm1, %v1453_v59, -inf }
 0x783   :  { %1484 = vmax.xlane.f32.xlu2 %v1483_v8 }
 0x79b   :  { %1365 = vrot.lane.b32.xlu2 %v2971_v58, %s2532_s2 }
 0x7a3   :  { %1625 = vrot.lane.b32.xlu2 %v2856_v17, %s2535_s8 }
 0x7ac   :  { %v1295_v9 = vpop.xlane.xlu2 %1294 }
 0x7ad   :  { %v1301_v10 = vsub.f32 %v1282_v1, %v1295_v9 }
 0x7af   :  { %v1307_v12 = vmul.f32 1.442695, %v1301_v10 }
 0x7b1   :  { %2442 = vpow2.f32 %v1307_v12 }
 0x7b4   :  { %v1298_v13 = vpop.xlane.xlu1 %1297 }
 0x7b5   :  { %v1302_v18 = vsub.f32 %v1284_v5, %v1298_v13 }
 0x7b7   :  { %v2443_v19 = vpop.eup %2442  ;;  %v1309_v16 = vmul.f32 1.442695, %v1302_v18  ;;  %v1229_v24 = vpop.f32.mrf.mxu2 }
 0x7b8   :  { %v3150_v20 = vadd.f32 %v1229_v24, %v3106_v0  ;;  %v1317_v21 = vsel %vm517_vm1, %v2443_v19, 0.0 }
 0x7b9   :  { %2444 = vpow2.f32 %v1309_v16  ;;  %1318 = vadd.xlane.f32.xlu1 %v1317_v21 }
 0x7bf   :  { %v2445_v22 = vpop.eup %2444  ;;  %v3153_v28 = vpop.f32.mrf.mxu2 }
 0x7c0   :  { %v1320_v29 = vsel %vm517_vm1, %v2445_v22, 0.0 }
 0x7c1   :  { %1321 = vadd.xlane.f32.xlu0 %v1320_v29 }
 0x7c7   :  { %v1475_v30 = vpop.f32.mrf.mxu2 }
 0x7c8   :  { %v1486_v31 = vsel %vm517_vm1, %v1475_v30, -inf }
 0x7cc   :  { %1487 = vmax.xlane.f32.xlu2 %v1486_v31 }
 0x7cf   :  { %v1477_v51 = vpop.f32.mrf.mxu2 }
 0x7d0   :  { %v1489_v1 = vsel %vm517_vm1, %v1477_v51, -inf }
 0x7e7   :  { %v1416_v32 = vpop.f32.mrf.mxu0 }
 0x7e8   :  { %v3158_v33 = vadd.f32 %v1416_v32, %v3108_v6 }
 0x7ee   :  { %v1482_v0 = vpop.xlane.xlu0 %1481 }
 0x7ef   :  { %v1492_v34 = vsub.f32 %v1451_v25, %v1482_v0  ;;  %v2281_v0 = vld [vmem:[%s3287_s5 + $0x28] sm:$0xff] }
 0x7f0   :  { %1607 = vmatpush.msra.mxu2 %v2281_v0 }
 0x7f1   :  { %v1496_v35 = vmul.f32 1.442695, %v1492_v34 }
 0x7f3   :  { %2446 = vpow2.f32 %v1496_v35 }
 0x7f6   :  { %v1485_v36 = vpop.xlane.xlu2 %1484 }
 0x7f7   :  { %v1493_v37 = vsub.f32 %v1453_v59, %v1485_v36 }
 0x7f9   :  { %v2447_v38 = vpop.eup %2446  ;;  %v1498_v39 = vmul.f32 1.442695, %v1493_v37 }
 0x7fa   :  { %v1504_v40 = vsel %vm517_vm1, %v2447_v38, 0.0 }
 0x7fb   :  { %2448 = vpow2.f32 %v1498_v39  ;;  %1505 = vadd.xlane.f32.xlu1 %v1504_v40 }
 0x7fe   :  { %v1366_v27 = vpop.permute.xlu2 %1365 }
 0x7ff   :  { %1378 = vmatpush.bf16.msrb.mxu3 %v1366_v27 }
 0x801   :  { %v2449_v41 = vpop.eup %2448 }
 0x802   :  { %v1507_v42 = vsel %vm517_vm1, %v2449_v41, 0.0 }
 0x803   :  { %1508 = vadd.xlane.f32.xlu0 %v1507_v42 }
 0x806   :  { %v1626_v26 = vpop.permute.xlu2 %1625 }
 0x814   :  { %1533 = vrot.lane.b32.xlu1 %v2968_v45, %s2533_s11 }
 0x817   :  { %1627 = vrot.lane.b32.xlu0 %v2856_v17, %s2536_s15 }
 0x82c   :  { %v1319_v6 = vpop.xlane.xlu1 %1318 }
 0x82d   :  { %2450 = vrcp.f32 %v1319_v6 }
 0x833   :  { %v2451_v44 = vpop.eup %2450 }
 0x834   :  { %v1322_v43 = vpop.xlane.xlu0 %1321  ;;  %v1329_v46 = vmul.f32 %v2451_v44, %v2443_v19 }
 0x835   :  { %2452 = vrcp.f32 %v1322_v43 }
 0x836   :  { %v1333_v48 = vpack.c.bf16 %v1329_v46, %v1329_v46 }
 0x838   :  { %v1362_v54 = vunpack.c.l.b16 %v1333_v48 }
 0x83b   :  { %v2453_v47 = vpop.eup %2452 }
 0x83c   :  { %v1330_v49 = vmul.f32 %v2453_v47, %v2445_v22 }
 0x83e   :  { %v1334_v52 = vpack.c.bf16 %v1330_v49, %v1330_v49 }
 0x83f   :  { %v1488_v53 = vpop.xlane.xlu2 %1487 }
 0x840   :  { %v1363_v57 = vunpack.c.l.b16 %v1334_v52  ;;  %v1494_v63 = vsub.f32 %v1475_v30, %v1488_v53 }
 0x841   :  { %1490 = vmax.xlane.f32.xlu0 %v1489_v1 }
 0x842   :  { %v1364_v3 = vpack.c.b16 %v1363_v57, %v1362_v54  ;;  %v1500_v4 = vmul.f32 1.442695, %v1494_v63 }
 0x844   :  { %2454 = vpow2.f32 %v1500_v4  ;;  %2271 = vmatmul.msk.bf16.vlgmr.msrb.gmra.mxu3 %vm517_vm1, %v1364_v3 }
 0x84a   :  { %v3168_v5 = vpop.eup %2454 }
 0x84b   :  { %v1510_v55 = vsel %vm517_vm1, %v3168_v5, 0.0 }
 0x84c   :  { %1511 = vadd.xlane.f32.xlu1 %v1510_v55 }
 0x855   :  { %1558 = vrot.lane.b32.xlu0 %v2971_v58, %s2533_s11 }
 0x85d   :  { %1726 = vrot.lane.b32.xlu0 %v2968_v45, %s2535_s8 }
 0x865   :  { %1820 = vrot.lane.b32.xlu0 %v2856_v17, %s2537_s4 }
 0x86d   :  { %1818 = vrot.lane.b32.xlu0 %v2856_v17, %s2538_s16 }
 0x86e   :  { %v1506_v14 = vpop.xlane.xlu1 %1505 }
 0x86f   :  { %2456 = vrcp.f32 %v1506_v14 }
 0x875   :  { %1842 = vrot.lane.b32.xlu0 %v2925_v2, %s2538_s16  ;;  %v2457_v23 = vpop.eup %2456 }
 0x876   :  { %v1509_v15 = vpop.xlane.xlu0 %1508  ;;  %v1520_v25 = vmul.f32 %v2457_v23, %v2447_v38 }
 0x877   :  { %2458 = vrcp.f32 %v1509_v15 }
 0x878   :  { %v1524_v8 = vpack.c.bf16 %v1520_v25, %v1520_v25 }
 0x87a   :  { %v1530_v10 = vunpack.c.l.b16 %v1524_v8 }
 0x87d   :  { %v2459_v56 = vpop.eup %2458 }
 0x87e   :  { %v1521_v7 = vmul.f32 %v2459_v56, %v2449_v41 }
 0x880   :  { %v1525_v59 = vpack.c.bf16 %v1521_v7, %v1521_v7 }
 0x882   :  { %v1531_v9 = vunpack.c.l.b16 %v1525_v59 }
 0x884   :  { %v1532_v13 = vpack.c.b16 %v1531_v9, %v1530_v10 }
 0x886   :  { %v1534_v12 = vpop.permute.xlu1 %1533 }
 0x887   :  { %1546 = vmatpush.bf16.msra.mxu3 %v1534_v12 }
 0x889   :  { %v1628_v18 = vpop.permute.xlu0 %1627 }
 0x88a   :  { %v1633_v17 = vsel %vm469_vm0, %v1628_v18, 0  ;;  %2279 = vmatmul.msk.bf16.vlgmr.msra.gmra.mxu3 %vm517_vm1, %v1532_v13 }
 0x88b   :  { %1642 = vmatpush.bf16.xpose.msrb.mxu3 %v1633_v17 }
 0x89a   :  { %2286 = vmatmul.msk.bf16.vlgmr.msrb.gmra.mxu3 %vm469_vm0, %v1626_v26  ;;  %v3198_v26 = vpop.f32.mrf.mxu0 }
 0x8b4   :  { %v1491_v19 = vpop.xlane.xlu0 %1490 }
 0x8b5   :  { %v1495_v16 = vsub.f32 %v1477_v51, %v1491_v19 }
 0x8b7   :  { %v1502_v24 = vmul.f32 1.442695, %v1495_v16 }
 0x8b9   :  { %2460 = vpow2.f32 %v1502_v24 }
 0x8bf   :  { %v2461_v21 = vpop.eup %2460  ;;  %v1512_v40 = vpop.xlane.xlu1 %1511 }
 0x8c0   :  { %v1513_v22 = vsel %vm517_vm1, %v2461_v21, 0.0  ;;  %2462 = vrcp.f32 %v1512_v40 }
 0x8c1   :  { %1514 = vadd.xlane.f32.xlu2 %v1513_v22 }
 0x8c6   :  { %v2463_v41 = vpop.eup %2462 }
 0x8c7   :  { %v1380_v29 = vpop.f32.mrf.mxu3  ;;  %v1559_v30 = vpop.permute.xlu0 %1558  ;;  %v1522_v42 = vmul.f32 %v2463_v41, %v3168_v5 }
 0x8c8   :  { %2275 = vmatmul.msk.f32.gmra.mxu0 %vm469_vm0, %v1380_v29  ;;  %1571 = vmatpush.bf16.msra.mxu1 %v1559_v30 }
 0x8c9   :  { %v1526_v43 = vpack.c.bf16 %v1522_v42, %v1522_v42 }
 0x8cb   :  { %v1555_v47 = vunpack.c.l.b16 %v1526_v43 }
 0x8cf   :  { %v1382_v31 = vpop.f32.mrf.mxu3  ;;  %v1727_v32 = vpop.permute.xlu0 %1726 }
 0x8d0   :  { %2276 = vmatmul.msk.f32.gmra.mxu0 %vm469_vm0, %v1382_v31  ;;  %1739 = vmatpush.bf16.msrb.mxu1 %v1727_v32 }
 0x8d7   :  { %v1821_v49 = vpop.permute.xlu0 %1820 }
 0x8d8   :  { %v1826_v52 = vsel %vm469_vm0, %v1821_v49, 0 }
 0x8df   :  { %v1819_v9 = vpop.permute.xlu0 %1818 }
 0x8e7   :  { %v1843_v16 = vpop.permute.xlu0 %1842 }
 0x90d   :  { %v1548_v34 = vpop.f32.mrf.mxu3 }
 0x90e   :  { %2282 = vmatmul.msk.f32.vlgmr.msra.gmra.mxu2 %vm469_vm0, %v1548_v34 }
 0x915   :  { %v1550_v35 = vpop.f32.mrf.mxu3 }
 0x916   :  { %2283 = vmatmul.msk.f32.gmra.mxu2 %vm469_vm0, %v1550_v35  ;;  %v2290_v35 = vld [vmem:[%s3287_s5 + $0x30] sm:$0xff] }
 0x91d   :  { %v1644_v36 = vpop.f32.mrf.mxu3 }
 0x91e   :  { %v1673_v37 = vsel %vm517_vm1, %v1644_v36, -inf }
 0x91f   :  { %1674 = vmax.xlane.f32.xlu2 %v1673_v37 }
 0x925   :  { %v1646_v38 = vpop.f32.mrf.mxu3 }
 0x926   :  { %v1676_v39 = vsel %vm517_vm1, %v1646_v38, -inf }
 0x927   :  { %1677 = vmax.xlane.f32.xlu1 %v1676_v39 }
 0x934   :  { %v1515_v27 = vpop.xlane.xlu2 %1514 }
 0x935   :  { %2464 = vrcp.f32 %v1515_v27 }
 0x937   :  { %1651 = vrot.lane.b32.xlu2 %v2925_v2, %s2536_s15 }
 0x93b   :  { %v2465_v6 = vpop.eup %2464 }
 0x93c   :  { %v1523_v44 = vmul.f32 %v2465_v6, %v2461_v21 }
 0x93e   :  { %v1527_v46 = vpack.c.bf16 %v1523_v44, %v1523_v44 }
 0x940   :  { %v1556_v48 = vunpack.c.l.b16 %v1527_v46 }
 0x942   :  { %v1557_v51 = vpack.c.b16 %v1556_v48, %v1555_v47 }
 0x944   :  { %2280 = vmatmul.msk.bf16.vlgmr.msra.gmra.mxu1 %vm517_vm1, %v1557_v51 }
 0x945   :  { %1835 = vmatpush.bf16.xpose.msra.mxu1 %v1826_v52  ;;  %v1422_v53 = vpop.f32.mrf.mxu0 }
 0x946   :  { %v1430_v54 = vadd.f32 %v1422_v53, %v3150_v20 }
 0x94d   :  { %v3227_v37 = vpop.f32.mrf.mxu0 }
 0x991   :  { %v1609_v57 = vpop.f32.mrf.mxu2 }
 0x992   :  { %v3204_v63 = vadd.f32 %v1609_v57, %v3158_v33  ;;  %v1675_v1 = vpop.xlane.xlu2 %1674 }
 0x993   :  { %v1685_v3 = vsub.f32 %v1644_v36, %v1675_v1 }
 0x995   :  { %v1689_v4 = vmul.f32 1.442695, %v1685_v3 }
 0x997   :  { %2466 = vpow2.f32 %v1689_v4 }
 0x999   :  { %v3220_v32 = vpop.f32.mrf.mxu2 }
 0x99a   :  { %v1678_v5 = vpop.xlane.xlu1 %1677  ;;  %v1652_v55 = vpop.permute.xlu2 %1651 }
 0x99b   :  { %v1686_v14 = vsub.f32 %v1646_v38, %v1678_v5  ;;  %v1657_v15 = vsel %vm469_vm0, %v1652_v55, 0 }
 0x99c   :  { %1666 = vmatpush.bf16.xpose.msrb.mxu0 %v1657_v15 }
 0x99d   :  { %v2467_v23 = vpop.eup %2466  ;;  %v1691_v56 = vmul.f32 1.442695, %v1686_v14 }
 0x99e   :  { %v1697_v25 = vsel %vm517_vm1, %v2467_v23, 0.0 }
 0x99f   :  { %2468 = vpow2.f32 %v1691_v56  ;;  %1698 = vadd.xlane.f32.xlu2 %v1697_v25 }
 0x9a4   :  { %1800 = vmatpush.msra.mxu0 %v2290_v35 }
 0x9a5   :  { %v2469_v20 = vpop.eup %2468 }
 0x9a6   :  { %v1700_v33 = vsel %vm517_vm1, %v2469_v20, 0.0 }
 0x9a7   :  { %1701 = vadd.xlane.f32.xlu1 %v1700_v33 }
 0x9b7   :  { %1844 = vrot.lane.b32.xlu2 %v2925_v2, %s2537_s4 }
 0x9c0   :  { %1649 = vrot.lane.b32.xlu1 %v2925_v2, %s2535_s8 }
 0x9c1   :  { %v1573_v7 = vpop.f32.mrf.mxu1 }
 0x9c2   :  { %2284 = vmatmul.msk.f32.gmra.mxu2 %vm469_vm0, %v1573_v7 }
 0x9c9   :  { %v1575_v59 = vpop.f32.mrf.mxu1 }
 0x9ca   :  { %2285 = vmatmul.msk.f32.gmra.mxu2 %vm469_vm0, %v1575_v59 }
 0xa12   :  { %v1699_v8 = vpop.xlane.xlu2 %1698 }
 0xa13   :  { %2470 = vrcp.f32 %v1699_v8 }
 0xa19   :  { %v2471_v13 = vpop.eup %2470 }
 0xa1a   :  { %v1702_v10 = vpop.xlane.xlu1 %1701  ;;  %v1845_v12 = vpop.permute.xlu2 %1844  ;;  %v1713_v17 = vmul.f32 %v2471_v13, %v2467_v23 }
 0xa1b   :  { %2472 = vrcp.f32 %v1702_v10  ;;  %v1850_v18 = vsel %vm469_vm0, %v1845_v12, 0 }
 0xa1c   :  { %1859 = vmatpush.bf16.xpose.msrb.mxu2 %v1850_v18  ;;  %v1717_v2 = vpack.c.bf16 %v1713_v17, %v1713_v17 }
 0xa1e   :  { %v1723_v22 = vunpack.c.l.b16 %v1717_v2 }
 0xa21   :  { %v2473_v19 = vpop.eup %2472 }
 0xa22   :  { %v1714_v24 = vmul.f32 %v2473_v19, %v2469_v20 }
 0xa23   :  { %2296 = vmatmul.msk.bf16.vlgmr.msrb.gmra.mxu2 %vm469_vm0, %v1843_v16 }
 0xa24   :  { %v1718_v21 = vpack.c.bf16 %v1714_v24, %v1714_v24 }
 0xa26   :  { %v1724_v29 = vunpack.c.l.b16 %v1718_v21 }
 0xa28   :  { %v1725_v30 = vpack.c.b16 %v1724_v29, %v1723_v22 }
 0xa2a   :  { %2288 = vmatmul.msk.bf16.vlgmr.msrb.gmra.mxu1 %vm517_vm1, %v1725_v30 }
 0xa32   :  { %v1650_v31 = vpop.permute.xlu1 %1649 }
 0xa33   :  { %2287 = vmatmul.msk.bf16.vlgmr.msrb.gmra.mxu0 %vm469_vm0, %v1650_v31 }
 0xa3a   :  { %2295 = vmatmul.msk.bf16.vlgmr.msra.gmra.mxu1 %vm469_vm0, %v1819_v9 }
 0xa45   :  { %v1615_v0 = vpop.f32.mrf.mxu2 }
 0xa46   :  { %v3222_v34 = vadd.f32 %v1615_v0, %v1430_v54 }
 0xa4d   :  { %v3230_v38 = vpop.f32.mrf.mxu2 }
 0xaa6   :  { %v1861_v41 = vpop.f32.mrf.mxu2 }
 0xaa7   :  { %v1741_v36 = vpop.f32.mrf.mxu1  ;;  %v1872_v51 = vsel %vm517_vm1, %v1861_v41, -inf }
 0xaa8   :  { %2291 = vmatmul.msk.f32.vlgmr.msra.gmra.mxu0 %vm469_vm0, %v1741_v36 }
 0xaae   :  { %v1863_v46 = vpop.f32.mrf.mxu2 }
 0xaaf   :  { %v1743_v39 = vpop.f32.mrf.mxu1  ;;  %v1875_v49 = vsel %vm517_vm1, %v1863_v46, -inf }
 0xab0   :  { %v1668_v40 = vpop.f32.mrf.mxu0  ;;  %2292 = vmatmul.msk.f32.gmra.mxu0 %vm469_vm0, %v1743_v39 }
 0xab1   :  { %v1679_v27 = vsel %vm517_vm1, %v1668_v40, -inf }
 0xab2   :  { %1680 = vmax.xlane.f32.xlu1 %v1679_v27 }
 0xab7   :  { %v1837_v42 = vpop.f32.mrf.mxu1 }
 0xab8   :  { %v1670_v6 = vpop.f32.mrf.mxu0  ;;  %v1866_v43 = vsel %vm517_vm1, %v1837_v42, -inf }
 0xab9   :  { %1867 = vmax.xlane.f32.xlu0 %v1866_v43  ;;  %v1682_v44 = vsel %vm517_vm1, %v1670_v6, -inf }
 0xaba   :  { %1683 = vmax.xlane.f32.xlu2 %v1682_v44 }
 0xabf   :  { %v1839_v47 = vpop.f32.mrf.mxu1 }
 0xac0   :  { %v1869_v48 = vsel %vm517_vm1, %v1839_v47, -inf }
 0xac1   :  { %1870 = vmax.xlane.f32.xlu1 %v1869_v48  ;;  %1876 = vmax.xlane.f32.xlu0 %v1875_v49 }
 0xac2   :  { %1873 = vmax.xlane.f32.xlu2 %v1872_v51 }
 0xad5   :  { %1751 = vrot.lane.b32.xlu0 %v2971_v58, %s2535_s8 }
 0xb25   :  { %v1681_v52 = vpop.xlane.xlu1 %1680 }
 0xb26   :  { %v1687_v53 = vsub.f32 %v1668_v40, %v1681_v52 }
 0xb28   :  { %v1693_v54 = vmul.f32 1.442695, %v1687_v53 }
 0xb2a   :  { %2474 = vpow2.f32 %v1693_v54 }
 0xb2c   :  { %v1868_v57 = vpop.xlane.xlu0 %1867 }
 0xb2d   :  { %v1878_v1 = vsub.f32 %v1837_v42, %v1868_v57  ;;  %v1684_v3 = vpop.xlane.xlu2 %1683 }
 0xb2e   :  { %v1688_v4 = vsub.f32 %v1670_v6, %v1684_v3 }
 0xb2f   :  { %v1882_v5 = vmul.f32 1.442695, %v1878_v1 }
 0xb30   :  { %v2475_v55 = vpop.eup %2474  ;;  %v1695_v14 = vmul.f32 1.442695, %v1688_v4 }
 0xb31   :  { %2476 = vpow2.f32 %v1882_v5  ;;  %v1703_v15 = vsel %vm517_vm1, %v2475_v55, 0.0 }
 0xb32   :  { %2478 = vpow2.f32 %v1695_v14  ;;  %1704 = vadd.xlane.f32.xlu1 %v1703_v15 }
 0xb34   :  { %v1877_v23 = vpop.xlane.xlu0 %1876  ;;  %v1871_v20 = vpop.xlane.xlu1 %1870 }
 0xb35   :  { %v1881_v56 = vsub.f32 %v1863_v46, %v1877_v23  ;;  %v1874_v25 = vpop.xlane.xlu2 %1873  ;;  %v1879_v12 = vsub.f32 %v1839_v47, %v1871_v20  ;;  %v2299_v20 = vld [vmem:[%s3287_s5 + $0x38] sm:$0xff] }
 0xb36   :  { %v1880_v33 = vsub.f32 %v1861_v41, %v1874_v25  ;;  %1993 = vmatpush.msra.mxu2 %v2299_v20 }
 0xb37   :  { %v2477_v7 = vpop.eup %2476  ;;  %v1888_v59 = vmul.f32 1.442695, %v1881_v56  ;;  %v1884_v18 = vmul.f32 1.442695, %v1879_v12  ;;  %v1802_v12 = vpop.f32.mrf.mxu0 }
 0xb38   :  { %v2479_v8 = vpop.eup %2478  ;;  %v1886_v9 = vmul.f32 1.442695, %v1880_v33  ;;  %v1890_v10 = vsel %vm517_vm1, %v2477_v7, 0.0 }
 0xb39   :  { %v1706_v13 = vsel %vm517_vm1, %v2479_v8, 0.0  ;;  %2480 = vpow2.f32 %v1888_v59 }
 0xb3a   :  { %1707 = vadd.xlane.f32.xlu2 %v1706_v13  ;;  %1891 = vadd.xlane.f32.xlu1 %v1890_v10  ;;  %2482 = vpow2.f32 %v1886_v9  ;;  %v1814_v13 = vadd.f32 %v1802_v12, %v3204_v63 }
 0xb3b   :  { %2484 = vpow2.f32 %v1884_v18  ;;  %v2369_v18 = vld [vmem:[%s3288_s6] ss:$0 sm:$0xff]  ;;  %s2539_s6 = smov [#allocation2]  }
 0xb3c   :  { %s2027_s23 = sshll.u32 %s2539_s6, 4  ;;  %s2028_s23 = int_to_ptr.vmem [resolvable:$true] %s2027_s23 }
 0xb3f   :  { %v2481_v17 = vpop.eup %2480 }
 0xb40   :  { %v2483_v19 = vpop.eup %2482  ;;  %v1899_v16 = vsel %vm517_vm1, %v2481_v17, 0.0 }
 0xb41   :  { %1900 = vadd.xlane.f32.xlu0 %v1899_v16  ;;  %v1896_v2 = vsel %vm517_vm1, %v2483_v19, 0.0  ;;  %v2485_v24 = vpop.eup %2484 }
 0xb42   :  { %1897 = vadd.xlane.f32.xlu2 %v1896_v2  ;;  %v1893_v22 = vsel %vm517_vm1, %v2485_v24, 0.0  ;;  %v1805_v2 = vpop.f32.mrf.mxu0 }
 0xb47   :  { %v1752_v21 = vpop.permute.xlu0 %1751 }
 0xb48   :  { %1764 = vmatpush.bf16.msra.mxu3 %v1752_v21 }
 0xb4a   :  { %1894 = vadd.xlane.f32.xlu2 %v1893_v22 }
 0xb53   :  { %1919 = vrot.lane.b32.xlu1 %v2968_v45, %s2538_s16 }
 0xb62   :  { %1944 = vrot.lane.b32.xlu2 %v2971_v58, %s2538_s16 }
 0xba5   :  { %v1705_v29 = vpop.xlane.xlu1 %1704 }
 0xba6   :  { %2486 = vrcp.f32 %v1705_v29 }
 0xbac   :  { %v2487_v31 = vpop.eup %2486 }
 0xbad   :  { %v1708_v30 = vpop.xlane.xlu2 %1707  ;;  %v1715_v0 = vmul.f32 %v2487_v31, %v2475_v55  ;;  %v1892_v27 = vpop.xlane.xlu1 %1891 }
 0xbae   :  { %2488 = vrcp.f32 %v1708_v30 }
 0xbaf   :  { %v1719_v36 = vpack.c.bf16 %v1715_v0, %v1715_v0 }
 0xbb1   :  { %v1748_v6 = vunpack.c.l.b16 %v1719_v36 }
 0xbb4   :  { %v2489_v35 = vpop.eup %2488  ;;  %v1901_v40 = vpop.xlane.xlu0 %1900 }
 0xbb5   :  { %v1716_v39 = vmul.f32 %v2489_v35, %v2479_v8  ;;  %2490 = vrcp.f32 %v1901_v40  ;;  %v1898_v41 = vpop.xlane.xlu2 %1897  ;;  %v851_v35 = vadd.f32 %v3040_v62, %v3099_v50 }
 0xbb6   :  { %2492 = vrcp.f32 %v1898_v41 }
 0xbb7   :  { %v1720_v42 = vpack.c.bf16 %v1716_v39, %v1716_v39  ;;  %2494 = vrcp.f32 %v1892_v27  ;;  %v1045_v36 = vadd.f32 %v3129_v61, %v851_v35 }
 0xbb9   :  { %v1749_v45 = vunpack.c.l.b16 %v1720_v42 }
 0xbbb   :  { %v1750_v43 = vpack.c.b16 %v1749_v45, %v1748_v6  ;;  %v2491_v58 = vpop.eup %2490 }
 0xbbc   :  { %v2493_v44 = vpop.eup %2492  ;;  %v1909_v46 = vmul.f32 %v2491_v58, %v2481_v17 }
 0xbbd   :  { %2289 = vmatmul.msk.bf16.vlgmr.msra.gmra.mxu3 %vm517_vm1, %v1750_v43  ;;  %v1908_v47 = vmul.f32 %v2493_v44, %v2483_v19  ;;  %v1895_v48 = vpop.xlane.xlu2 %1894  ;;  %v2495_v49 = vpop.eup %2494  ;;  %v1236_v19 = vadd.f32 %v3147_v11, %v3103_v60 }
 0xbbe   :  { %2496 = vrcp.f32 %v1895_v48  ;;  %v1913_v51 = vpack.c.bf16 %v1909_v46, %v1909_v46  ;;  %v1906_v53 = vmul.f32 %v2495_v49, %v2477_v7 }
 0xbbf   :  { %v1912_v52 = vpack.c.bf16 %v1908_v47, %v1908_v47 }
 0xbc0   :  { %v1942_v54 = vunpack.c.l.b16 %v1913_v51  ;;  %v1910_v4 = vpack.c.bf16 %v1906_v53, %v1906_v53 }
 0xbc1   :  { %v1941_v57 = vunpack.c.l.b16 %v1912_v52 }
 0xbc2   :  { %v1916_v23 = vunpack.c.l.b16 %v1910_v4 }
 0xbc3   :  { %v1943_v14 = vpack.c.b16 %v1942_v54, %v1941_v57 }
 0xbc4   :  { %v2497_v1 = vpop.eup %2496 }
 0xbc5   :  { %v1920_v3 = vpop.permute.xlu1 %1919  ;;  %v1907_v5 = vmul.f32 %v2497_v1, %v2485_v24  ;;  %v1945_v55 = vpop.permute.xlu2 %1944  ;;  %v1429_v24 = vadd.f32 %v3198_v26, %v1236_v19  ;;  %v1238_v26 = vadd.f32 %v3153_v28, %v1045_v36 }
 0xbc6   :  { %1932 = vmatpush.bf16.msrb.mxu3 %v1920_v3  ;;  %1957 = vmatpush.bf16.msrb.mxu1 %v1945_v55 }
 0xbc7   :  { %v1911_v15 = vpack.c.bf16 %v1907_v5, %v1907_v5  ;;  %v1622_v22 = vadd.f32 %v3220_v32, %v1429_v24  ;;  %v1431_v32 = vadd.f32 %v3227_v37, %v1238_v26 }
 0xbc9   :  { %v1917_v56 = vunpack.c.l.b16 %v1911_v15  ;;  %2298 = vmatmul.msk.bf16.vlgmr.msrb.gmra.mxu1 %vm517_vm1, %v1943_v14  ;;  %v1815_v29 = vadd.f32 %v1805_v2, %v1622_v22  ;;  %v1624_v41 = vadd.f32 %v3230_v38, %v1431_v32 }
 0xbcb   :  { %v1918_v25 = vpack.c.b16 %v1917_v56, %v1916_v23 }
 0xbcd   :  { %2297 = vmatmul.msk.bf16.vlgmr.msrb.gmra.mxu3 %vm517_vm1, %v1918_v25 }
 0xc40   :  { %v1766_v33 = vpop.f32.mrf.mxu3 }
 0xc41   :  { %2293 = vmatmul.msk.f32.gmra.mxu0 %vm469_vm0, %v1766_v33 }
 0xc46   :  { %v1959_v9 = vpop.f32.mrf.mxu1 }
 0xc48   :  { %v1768_v7 = vpop.f32.mrf.mxu3 }
 0xc49   :  { %2294 = vmatmul.msk.f32.gmra.mxu0 %vm469_vm0, %v1768_v7 }
 0xc4e   :  { %v1961_v10 = vpop.f32.mrf.mxu1 }
 0xc50   :  { %v1934_v59 = vpop.f32.mrf.mxu3 }
 0xc51   :  { %2300 = vmatmul.msk.f32.vlgmr.msra.gmra.mxu2 %vm469_vm0, %v1934_v59 }
 0xc58   :  { %v1936_v8 = vpop.f32.mrf.mxu3 }
 0xc59   :  { %2301 = vmatmul.msk.f32.gmra.mxu2 %vm469_vm0, %v1936_v8 }
 0xc61   :  { %2302 = vmatmul.msk.f32.gmra.mxu2 %vm469_vm0, %v1959_v9 }
 0xc69   :  { %2303 = vmatmul.msk.f32.gmra.mxu2 %vm469_vm0, %v1961_v10 }
 0xcbe   :  { %v1808_v63 = vpop.f32.mrf.mxu0 }
 0xcbf   :  { %v1816_v60 = vadd.f32 %v1808_v63, %v3222_v34 }
 0xcc6   :  { %v1811_v27 = vpop.f32.mrf.mxu0 }
 0xcc7   :  { %v1817_v42 = vadd.f32 %v1811_v27, %v1624_v41 }
 0xcd4   :  { %v1995_v17 = vpop.f32.mrf.mxu2 }
 0xcd5   :  { %v2007_v16 = vadd.f32 %v1995_v17, %v1814_v13 }
 0xcd7   :  { %v2015_v21 = vadd.f32 %v2369_v18, %v2007_v16 }
 0xcd9   :  { %2019 = vst [vmem:[#allocation2] sm:$0xff] %v2015_v21 }
 0xcdc   :  { %v1998_v30 = vpop.f32.mrf.mxu2 }
 0xcdd   :  { %v2008_v31 = vadd.f32 %v1998_v30, %v1815_v29 }
 0xcdf   :  { %v2016_v0 = vadd.f32 %v2369_v18, %v2008_v31 }
 0xce1   :  { %2020 = vst [vmem:[#allocation2 + $0x8] sm:$0xff] %v2016_v0 }
 0xce4   :  { %v2001_v11 = vpop.f32.mrf.mxu2 }
 0xce5   :  { %v2009_v39 = vadd.f32 %v2001_v11, %v1816_v60 }
 0xce7   :  { %v2017_v40 = vadd.f32 %v2369_v18, %v2009_v39 }
 0xce9   :  { %2021 = vst [vmem:[#allocation2 + $0x10] sm:$0xff] %v2017_v40 }
 0xcec   :  { %v2004_v62 = vpop.f32.mrf.mxu2 }
 0xced   :  { %v2010_v50 = vadd.f32 %v2004_v62, %v1817_v42 }
 0xcef   :  { %v2018_v61 = vadd.f32 %v2369_v18, %v2010_v50 }
 0xcf1   :  { %2022 = vst [vmem:[#allocation2 + $0x18] sm:$0xff] %v2018_v61 }
 0xcf2   :  { %2035 = dma.vmem_to_hbm [thread:$0]  %s2028_s23, 512, %s2030_s26, [#allocation3], %s2540_s27, %s2540_s27, %s2537_s4  }
 0xcf3   :  { %2522 = dma.done.wait [#allocation3], 512  }
 0xcf4   :  { %2523 = vsyncadd [#allocation3], 4294966784 }
 0xcf5   :  { %2040 = vsyncpa [#allocation3], 1 }

</bundles_post_ra>
